<compile_context>
chip_gen: v7x
topology: tpu7x:2x2x1
jax: 0.10.0
libtpu: 0.0.40
codegen_flags: <defaults>
</compile_context>

<pallas_src>
import functools

import jax
import jax.numpy as jnp
from jax.experimental import pallas as pl
from jax.experimental.pallas import tpu as pltpu

_BN_EPS = 1e-5

# MXU staging dtype (bf16-native on v5e / v6e / v7x); accumulation is f32.
_MM_DTYPE = jnp.bfloat16

# For output phase p (0=even, 1=odd) and 2x2 tap index a (0,1), the original
# 4x4 ConvTranspose kernel index used along that axis (stride=2, padding=1):
#   out[2m+p] += x_pad[m + p + a] * w[..., KSEL[p][a]]   (x_pad has 1 zero ring)
_KSEL = ((3, 1), (2, 0))


# ------------------------- weight preparation (init) ------------------------

def _shift_grouped_convt_weight(w_iokk, dtype):
    """(Cin, Cout, 4, 4) ConvTranspose2d weight -> (9, Cin, 4*Cout).

    Shift index s = sy*3 + sx with (sy, sx) in {0,1,2}^2 being the input-slab
    offset into the 1-ring padded input.  For each shift, the 4 output-phase
    column blocks (ordered ph = py*2 + px) hold the kernel tap that shift
    contributes to that phase, or zeros if the phase is unreachable.
    """
    cin, cout = w_iokk.shape[0], w_iokk.shape[1]
    zero = jnp.zeros((cin, cout), w_iokk.dtype)
    mats = []
    for sy in range(3):
        for sx in range(3):
            blocks = []
            for py in (0, 1):
                for px in (0, 1):
                    ay, ax = sy - py, sx - px
                    if 0 <= ay <= 1 and 0 <= ax <= 1:
                        blocks.append(w_iokk[:, :, _KSEL[py][ay], _KSEL[px][ax]])
                    else:
                        blocks.append(zero)
            mats.append(jnp.concatenate(blocks, axis=1))   # (Cin, 4*Cout)
    return jnp.stack(mats, axis=0).astype(dtype)           # (9, Cin, 4*Cout)


def init_params(key, inplanes, planes):
    """Raw parameters in PyTorch layouts (deterministic synthetic values)."""
    k1, k2, k3, kb = jax.random.split(key, 4)
    kb = jax.random.split(kb, 6)

    def winit(k, shape, fan_in):
        return jax.random.normal(k, shape, jnp.float32) / jnp.sqrt(float(fan_in))

    def bn(kg, kbeta):
        return (1.0 + 0.1 * jax.random.normal(kg, (planes,), jnp.float32),
                0.1 * jax.random.normal(kbeta, (planes,), jnp.float32))

    return {
        # Conv2d(inplanes, planes, 1, bias=False): (Cout, Cin, 1, 1)
        "conv1_w": winit(k1, (planes, inplanes, 1, 1), inplanes),
        # ConvTranspose2d(planes, planes, 4, 2, 1, bias=False): (Cin, Cout, 4, 4)
        "conv2_w": winit(k2, (planes, planes, 4, 4), planes * 16),
        # upsample shortcut ConvTranspose2d(inplanes, planes, 4, 2, 1, bias=False)
        "up_w": winit(k3, (inplanes, planes, 4, 4), inplanes * 16),
        "bn1": bn(kb[0], kb[1]),
        "bn2": bn(kb[2], kb[3]),
        "bn_up": bn(kb[4], kb[5]),
    }


def prepare_params(raw):
    """Convert raw PyTorch-layout params into matmul-ready kernel operands."""
    planes = raw["conv1_w"].shape[0]
    return {
        # bf16 matmul weights (halved weight DMA / VMEM footprint)
        "w1": jnp.transpose(raw["conv1_w"][:, :, 0, 0], (1, 0)).astype(_MM_DTYPE),
        "w2": _shift_grouped_convt_weight(raw["conv2_w"], _MM_DTYPE),  # (9, Cp, 4Cp)
        "wu": _shift_grouped_convt_weight(raw["up_w"], _MM_DTYPE),     # (9, Cin, 4Cp)
        # BN affine params stay f32 (elementwise path is f32 on all gens)
        "g1": raw["bn1"][0].reshape(1, planes),
        "b1": raw["bn1"][1].reshape(1, planes),
        "g2": raw["bn2"][0].reshape(1, planes),
        "b2": raw["bn2"][1].reshape(1, planes),
        "gu": raw["bn_up"][0].reshape(1, planes),
        "bu": raw["bn_up"][1].reshape(1, planes),
    }


# ------------------------------ Pallas kernel -------------------------------

def _zero_border(ref, n, h, w, c):
    """Zero only the 1-pixel border of a (n, h+2, w+2, c) padded scratch."""
    z_row = jnp.zeros((n, 1, w + 2, c), ref.dtype)
    z_col = jnp.zeros((n, h + 2, 1, c), ref.dtype)
    ref[:, 0:1, :, :] = z_row
    ref[:, h + 1:h + 2, :, :] = z_row
    ref[:, :, 0:1, :] = z_col
    ref[:, :, w + 1:w + 2, :] = z_col


def _deconv_bottleneck_kernel(x_ref, w1_ref, w2_ref, wu_ref,
                              g1_ref, b1_ref, g2_ref, b2_ref, gu_ref, bu_ref,
                              out_ref, hp_ref, xq_ref, *, n, h, w, cin, cp):
    m0 = n * h * w
    x = x_ref[...]                                         # (n, h, w, cin) f32

    # ---- conv1 (1x1, bias=False) + BN1 (single-pass batch stats) + ReLU ----
    t = jnp.dot(x.reshape(m0, cin).astype(_MM_DTYPE), w1_ref[...],
                preferred_element_type=jnp.float32)        # (m0, cp) f32
    mu1 = jnp.sum(t, axis=0, keepdims=True) / m0
    var1 = jnp.sum(t * t, axis=0, keepdims=True) / m0 - mu1 * mu1
    hid = (t - mu1) * jax.lax.rsqrt(var1 + _BN_EPS) * g1_ref[...] + b1_ref[...]
    hid = jnp.maximum(hid, 0.0)

    # ---- fill 1-ring-padded VMEM scratches (border strips zeroed only) -----
    _zero_border(hp_ref, n, h, w, cp)
    _zero_border(xq_ref, n, h, w, cin)
    hp_ref[:, 1:h + 1, 1:w + 1, :] = hid.reshape(n, h, w, cp)
    xq_ref[:, 1:h + 1, 1:w + 1, :] = x

    # ---- ConvT(k=4,s=2,p=1): 9 distinct input shifts, 4 phases per matmul ---
    acc_m = jnp.zeros((m0, 4 * cp), jnp.float32)           # main branch, phase-major
    acc_s = jnp.zeros((m0, 4 * cp), jnp.float32)           # shortcut branch
    for sy in range(3):
        for sx in range(3):
            s = sy * 3 + sx
            hsl = hp_ref[:, sy:sy + h, sx:sx + w, :].reshape(m0, cp)
            acc_m = acc_m + jnp.dot(hsl.astype(_MM_DTYPE), w2_ref[s],
                                    preferred_element_type=jnp.float32)
            xsl = xq_ref[:, sy:sy + h, sx:sx + w, :].reshape(m0, cin)
            acc_s = acc_s + jnp.dot(xsl.astype(_MM_DTYPE), wu_ref[s],
                                    preferred_element_type=jnp.float32)

    # ---- BN2 / BN_up: single-pass batch stats folded over the 4 phases -----
    cnt = 4.0 * m0

    def fold4(v):        # (1, 4cp) -> (1, cp): sum the 4 phase column groups
        return (v[:, 0:cp] + v[:, cp:2 * cp]
                + v[:, 2 * cp:3 * cp] + v[:, 3 * cp:4 * cp])

    def tile4(v):        # (1, cp) -> (1, 4cp): replicate per phase group
        return jnp.concatenate([v, v, v, v], axis=1)

    def bn_scale_shift(acc, g_ref, b_ref):
        mu = fold4(jnp.sum(acc, axis=0, keepdims=True)) / cnt
        ex2 = fold4(jnp.sum(acc * acc, axis=0, keepdims=True)) / cnt
        inv = jax.lax.rsqrt(ex2 - mu * mu + _BN_EPS)
        scale = g_ref[...] * inv
        shift = b_ref[...] - mu * scale
        return tile4(scale), tile4(shift)

    sc_m, sh_m = bn_scale_shift(acc_m, g2_ref, b2_ref)
    sc_s, sh_s = bn_scale_shift(acc_s, gu_ref, bu_ref)

    # ---- BN affine + residual add + ReLU, lane-dense (m0, 4*cp) store ------
    out_ref[...] = jnp.maximum(acc_m * sc_m + sh_m + acc_s * sc_s + sh_s, 0.0)


# --------------------------------- wrapper ----------------------------------

def deconv_bottleneck_forward(params, x_nchw):
    """Pallas forward pass. Accepts / returns NCHW like the PyTorch module."""
    x = jnp.transpose(x_nchw, (0, 2, 3, 1)).astype(jnp.float32)   # NCHW -> NHWC
    n, h, w, cin = x.shape
    cp = params["w1"].shape[1]
    m0 = n * h * w

    vmem = pl.BlockSpec(memory_space=pltpu.MemorySpace.VMEM)
    out = pl.pallas_call(
        functools.partial(_deconv_bottleneck_kernel,
                          n=n, h=h, w=w, cin=cin, cp=cp),
        out_shape=jax.ShapeDtypeStruct((m0, 4 * cp), jnp.float32),
        in_specs=[vmem] * 10,
        out_specs=vmem,
        scratch_shapes=[pltpu.VMEM((n, h + 2, w + 2, cp), jnp.float32),
                        pltpu.VMEM((n, h + 2, w + 2, cin), jnp.float32)],
        compiler_params=pltpu.CompilerParams(
            vmem_limit_bytes=32 * 1024 * 1024),
    )(x, params["w1"], params["w2"], params["wu"],
      params["g1"], params["b1"], params["g2"], params["b2"],
      params["gu"], params["bu"])

    # Cheap epilogue: interleave the 4 stride-2 phases (phase-major column
    # groups) and return NCHW to match the PyTorch module's layout.
    y = out.reshape(n, h, w, 2, 2, cp)                     # (n, i, j, py, px, c)
    y = jnp.transpose(y, (0, 1, 3, 2, 4, 5)).reshape(n, 2 * h, 2 * w, cp)
    return jnp.transpose(y, (0, 3, 1, 2))                  # NHWC -> NCHW


# ------------------------- pure-JAX reference (check) -----------------------

def _bn_train_ref(x_nhwc, gamma, beta):
    mu = jnp.mean(x_nhwc, axis=(0, 1, 2), keepdims=True)
    var = jnp.mean(jnp.square(x_nhwc - mu), axis=(0, 1, 2), keepdims=True)
    return (x_nhwc - mu) * jax.lax.rsqrt(var + _BN_EPS) * gamma + beta


def _convt_ref(x_nhwc, w_iokk, stride, padding):
    kh, kw = w_iokk.shape[2], w_iokk.shape[3]
    w_hwio = jnp.transpose(jnp.flip(w_iokk, (2, 3)), (2, 3, 0, 1))
    return jax.lax.conv_general_dilated(
        x_nhwc, w_hwio, window_strides=(1, 1),
        padding=[(kh - 1 - padding, kh - 1 - padding),
                 (kw - 1 - padding, kw - 1 - padding)],
        lhs_dilation=(stride, stride),
        dimension_numbers=("NHWC", "HWIO", "NHWC"),
        precision=jax.lax.Precision.HIGHEST)


def deconv_bottleneck_reference(raw, x_nchw):
    x = jnp.transpose(x_nchw, (0, 2, 3, 1)).astype(jnp.float32)
    w1 = jnp.transpose(raw["conv1_w"][:, :, 0, 0], (1, 0))
    hid = jnp.einsum("nhwc,cd->nhwd", x, w1, precision=jax.lax.Precision.HIGHEST)
    hid = jnp.maximum(_bn_train_ref(hid, *raw["bn1"]), 0.0)
    main = _bn_train_ref(_convt_ref(hid, raw["conv2_w"], 2, 1), *raw["bn2"])
    sc = _bn_train_ref(_convt_ref(x, raw["up_w"], 2, 1), *raw["bn_up"])
    y = jnp.maximum(main + sc, 0.0)
    return jnp.transpose(y, (0, 3, 1, 2))


# ----------------------------------- main ------------------------------------

if __name__ == "__main__":
    key = jax.random.PRNGKey(0)
    pkey, xkey = jax.random.split(key)

    # SMALL shapes consistent with the module (e.g. the 32->16 decoder stage).
    inplanes, planes, batch, hw = 32, 16, 2, 8
    raw = init_params(pkey, inplanes, planes)
    params = prepare_params(raw)
    x = jax.random.normal(xkey, (batch, inplanes, hw, hw), jnp.float32)

    fwd = jax.jit(deconv_bottleneck_forward)
    y = jax.block_until_ready(fwd(params, x))

    assert y.shape == (batch, planes, 2 * hw, 2 * hw), y.shape
    assert bool(jnp.all(jnp.isfinite(y)))

    # Correctness check against a pure-JAX/XLA (f32, HIGHEST precision)
    # implementation.  Tolerance loosened because the kernel stages its
    # matmuls in bf16 (f32 accumulation).
    y_ref = jax.block_until_ready(jax.jit(deconv_bottleneck_reference)(raw, x))
    max_err = float(jnp.max(jnp.abs(y - y_ref)))
    assert max_err < 2e-1, f"max abs err vs reference: {max_err}"

    print("KERNEL_OK")
</pallas_src>

<mosaic_0001>
module attributes {stable_mosaic.version = 11 : i64} {
  func.func @_deconv_bottleneck_kernel(%arg0: memref<2x8x8x32xf32, #tpu.memory_space<vmem>>, %arg1: memref<32x16xbf16, #tpu.memory_space<vmem>>, %arg2: memref<9x16x64xbf16, #tpu.memory_space<vmem>>, %arg3: memref<9x32x64xbf16, #tpu.memory_space<vmem>>, %arg4: memref<1x16xf32, #tpu.memory_space<vmem>>, %arg5: memref<1x16xf32, #tpu.memory_space<vmem>>, %arg6: memref<1x16xf32, #tpu.memory_space<vmem>>, %arg7: memref<1x16xf32, #tpu.memory_space<vmem>>, %arg8: memref<1x16xf32, #tpu.memory_space<vmem>>, %arg9: memref<1x16xf32, #tpu.memory_space<vmem>>, %arg10: memref<128x64xf32, #tpu.memory_space<vmem>>, %arg11: memref<2x10x10x16xf32, #tpu.memory_space<vmem>>, %arg12: memref<2x10x10x32xf32, #tpu.memory_space<vmem>>) attributes {dimension_semantics = [], scalar_prefetch = 0 : i64, scratch_operands = 2 : i64, tpu.core_type = #tpu.core_type<tc>} {
    %c0 = arith.constant 0 : index
    %c0_0 = arith.constant 0 : index
    %c0_1 = arith.constant 0 : index
    %c0_2 = arith.constant 0 : index
    %0 = vector.load %arg0[%c0, %c0_0, %c0_1, %c0_2] : memref<2x8x8x32xf32, #tpu.memory_space<vmem>>, vector<2x8x8x32xf32>
    %1 = vector.shape_cast %0 : vector<2x8x8x32xf32> to vector<128x32xf32>
    %2 = arith.truncf %1 : vector<128x32xf32> to vector<128x32xbf16>
    %c0_3 = arith.constant 0 : index
    %c0_4 = arith.constant 0 : index
    %3 = vector.load %arg1[%c0_3, %c0_4] : memref<32x16xbf16, #tpu.memory_space<vmem>>, vector<32x16xbf16>
    %cst = arith.constant dense<0.000000e+00> : vector<128x16xf32>
    %4 = tpu.matmul %2, %3, %cst {dimension_numbers = #tpu.dot_dimension_numbers<[1], [0], [0], [1], [0, 0, 1, 1], [], []>} : vector<128x32xbf16>, vector<32x16xbf16>, vector<128x16xf32> -> vector<128x16xf32>
    %cst_5 = arith.constant dense<0.000000e+00> : vector<16xf32>
    %5 = vector.multi_reduction <add>, %4, %cst_5 [0] : vector<128x16xf32> to vector<16xf32>
    %6 = vector.shape_cast %5 : vector<16xf32> to vector<1x16xf32>
    %cst_6 = arith.constant 1.280000e+02 : f32
    %7 = vector.broadcast %cst_6 : f32 to vector<1x16xf32>
    %8 = arith.divf %6, %7 : vector<1x16xf32>
    %9 = arith.mulf %4, %4 : vector<128x16xf32>
    %cst_7 = arith.constant dense<0.000000e+00> : vector<16xf32>
    %10 = vector.multi_reduction <add>, %9, %cst_7 [0] : vector<128x16xf32> to vector<16xf32>
    %11 = vector.shape_cast %10 : vector<16xf32> to vector<1x16xf32>
    %cst_8 = arith.constant 1.280000e+02 : f32
    %12 = vector.broadcast %cst_8 : f32 to vector<1x16xf32>
    %13 = arith.divf %11, %12 : vector<1x16xf32>
    %14 = arith.mulf %8, %8 : vector<1x16xf32>
    %15 = arith.subf %13, %14 : vector<1x16xf32>
    %16 = vector.broadcast %8 : vector<1x16xf32> to vector<128x16xf32>
    %17 = arith.subf %4, %16 : vector<128x16xf32>
    %cst_9 = arith.constant 9.99999974E-6 : f32
    %18 = vector.broadcast %cst_9 : f32 to vector<1x16xf32>
    %19 = arith.addf %15, %18 : vector<1x16xf32>
    %20 = math.rsqrt %19 : vector<1x16xf32>
    %21 = vector.broadcast %20 : vector<1x16xf32> to vector<128x16xf32>
    %22 = arith.mulf %17, %21 : vector<128x16xf32>
    %c0_10 = arith.constant 0 : index
    %c0_11 = arith.constant 0 : index
    %23 = vector.load %arg4[%c0_10, %c0_11] : memref<1x16xf32, #tpu.memory_space<vmem>>, vector<1x16xf32>
    %24 = vector.broadcast %23 : vector<1x16xf32> to vector<128x16xf32>
    %25 = arith.mulf %22, %24 : vector<128x16xf32>
    %c0_12 = arith.constant 0 : index
    %c0_13 = arith.constant 0 : index
    %26 = vector.load %arg5[%c0_12, %c0_13] : memref<1x16xf32, #tpu.memory_space<vmem>>, vector<1x16xf32>
    %27 = vector.broadcast %26 : vector<1x16xf32> to vector<128x16xf32>
    %28 = arith.addf %25, %27 : vector<128x16xf32>
    %cst_14 = arith.constant 0.000000e+00 : f32
    %29 = vector.broadcast %cst_14 : f32 to vector<128x16xf32>
    %30 = arith.maximumf %28, %29 : vector<128x16xf32>
    %cst_15 = arith.constant 0.000000e+00 : f32
    %31 = vector.broadcast %cst_15 : f32 to vector<2x1x10x16xf32>
    %cst_16 = arith.constant 0.000000e+00 : f32
    %32 = vector.broadcast %cst_16 : f32 to vector<2x10x1x16xf32>
    %c0_17 = arith.constant 0 : index
    %c0_18 = arith.constant 0 : index
    %c0_19 = arith.constant 0 : index
    %c0_20 = arith.constant 0 : index
    %33 = vector.load %arg11[%c0_17, %c0_18, %c0_19, %c0_20] : memref<2x10x10x16xf32, #tpu.memory_space<vmem>>, vector<2x1x10x16xf32>
    tpu.vector_store %arg11[%c0_17, %c0_18, %c0_19, %c0_20], %31 {strides = array<i32>} : memref<2x10x10x16xf32, #tpu.memory_space<vmem>>, vector<2x1x10x16xf32>,
    %c0_21 = arith.constant 0 : index
    %c9 = arith.constant 9 : index
    %c0_22 = arith.constant 0 : index
    %c0_23 = arith.constant 0 : index
    %34 = vector.load %arg11[%c0_21, %c9, %c0_22, %c0_23] : memref<2x10x10x16xf32, #tpu.memory_space<vmem>>, vector<2x1x10x16xf32>
    tpu.vector_store %arg11[%c0_21, %c9, %c0_22, %c0_23], %31 {strides = array<i32>} : memref<2x10x10x16xf32, #tpu.memory_space<vmem>>, vector<2x1x10x16xf32>,
    %c0_24 = arith.constant 0 : index
    %c0_25 = arith.constant 0 : index
    %c0_26 = arith.constant 0 : index
    %c0_27 = arith.constant 0 : index
    %35 = vector.load %arg11[%c0_24, %c0_25, %c0_26, %c0_27] : memref<2x10x10x16xf32, #tpu.memory_space<vmem>>, vector<2x10x1x16xf32>
    tpu.vector_store %arg11[%c0_24, %c0_25, %c0_26, %c0_27], %32 {strides = array<i32>} : memref<2x10x10x16xf32, #tpu.memory_space<vmem>>, vector<2x10x1x16xf32>,
    %c0_28 = arith.constant 0 : index
    %c0_29 = arith.constant 0 : index
    %c9_30 = arith.constant 9 : index
    %c0_31 = arith.constant 0 : index
    %36 = vector.load %arg11[%c0_28, %c0_29, %c9_30, %c0_31] : memref<2x10x10x16xf32, #tpu.memory_space<vmem>>, vector<2x10x1x16xf32>
    tpu.vector_store %arg11[%c0_28, %c0_29, %c9_30, %c0_31], %32 {strides = array<i32>} : memref<2x10x10x16xf32, #tpu.memory_space<vmem>>, vector<2x10x1x16xf32>,
    %cst_32 = arith.constant 0.000000e+00 : f32
    %37 = vector.broadcast %cst_32 : f32 to vector<2x1x10x32xf32>
    %cst_33 = arith.constant 0.000000e+00 : f32
    %38 = vector.broadcast %cst_33 : f32 to vector<2x10x1x32xf32>
    %c0_34 = arith.constant 0 : index
    %c0_35 = arith.constant 0 : index
    %c0_36 = arith.constant 0 : index
    %c0_37 = arith.constant 0 : index
    %39 = vector.load %arg12[%c0_34, %c0_35, %c0_36, %c0_37] : memref<2x10x10x32xf32, #tpu.memory_space<vmem>>, vector<2x1x10x32xf32>
    tpu.vector_store %arg12[%c0_34, %c0_35, %c0_36, %c0_37], %37 {strides = array<i32>} : memref<2x10x10x32xf32, #tpu.memory_space<vmem>>, vector<2x1x10x32xf32>,
    %c0_38 = arith.constant 0 : index
    %c9_39 = arith.constant 9 : index
    %c0_40 = arith.constant 0 : index
    %c0_41 = arith.constant 0 : index
    %40 = vector.load %arg12[%c0_38, %c9_39, %c0_40, %c0_41] : memref<2x10x10x32xf32, #tpu.memory_space<vmem>>, vector<2x1x10x32xf32>
    tpu.vector_store %arg12[%c0_38, %c9_39, %c0_40, %c0_41], %37 {strides = array<i32>} : memref<2x10x10x32xf32, #tpu.memory_space<vmem>>, vector<2x1x10x32xf32>,
    %c0_42 = arith.constant 0 : index
    %c0_43 = arith.constant 0 : index
    %c0_44 = arith.constant 0 : index
    %c0_45 = arith.constant 0 : index
    %41 = vector.load %arg12[%c0_42, %c0_43, %c0_44, %c0_45] : memref<2x10x10x32xf32, #tpu.memory_space<vmem>>, vector<2x10x1x32xf32>
    tpu.vector_store %arg12[%c0_42, %c0_43, %c0_44, %c0_45], %38 {strides = array<i32>} : memref<2x10x10x32xf32, #tpu.memory_space<vmem>>, vector<2x10x1x32xf32>,
    %c0_46 = arith.constant 0 : index
    %c0_47 = arith.constant 0 : index
    %c9_48 = arith.constant 9 : index
    %c0_49 = arith.constant 0 : index
    %42 = vector.load %arg12[%c0_46, %c0_47, %c9_48, %c0_49] : memref<2x10x10x32xf32, #tpu.memory_space<vmem>>, vector<2x10x1x32xf32>
    tpu.vector_store %arg12[%c0_46, %c0_47, %c9_48, %c0_49], %38 {strides = array<i32>} : memref<2x10x10x32xf32, #tpu.memory_space<vmem>>, vector<2x10x1x32xf32>,
    %43 = vector.shape_cast %30 : vector<128x16xf32> to vector<2x8x8x16xf32>
    %c0_50 = arith.constant 0 : index
    %c1 = arith.constant 1 : index
    %c1_51 = arith.constant 1 : index
    %c0_52 = arith.constant 0 : index
    %44 = vector.load %arg11[%c0_50, %c1, %c1_51, %c0_52] : memref<2x10x10x16xf32, #tpu.memory_space<vmem>>, vector<2x8x8x16xf32>
    tpu.vector_store %arg11[%c0_50, %c1, %c1_51, %c0_52], %43 {strides = array<i32>} : memref<2x10x10x16xf32, #tpu.memory_space<vmem>>, vector<2x8x8x16xf32>,
    %c0_53 = arith.constant 0 : index
    %c1_54 = arith.constant 1 : index
    %c1_55 = arith.constant 1 : index
    %c0_56 = arith.constant 0 : index
    %45 = vector.load %arg12[%c0_53, %c1_54, %c1_55, %c0_56] : memref<2x10x10x32xf32, #tpu.memory_space<vmem>>, vector<2x8x8x32xf32>
    tpu.vector_store %arg12[%c0_53, %c1_54, %c1_55, %c0_56], %0 {strides = array<i32>} : memref<2x10x10x32xf32, #tpu.memory_space<vmem>>, vector<2x8x8x32xf32>,
    %cst_57 = arith.constant 0.000000e+00 : f32
    %46 = vector.broadcast %cst_57 : f32 to vector<128x64xf32>
    %cst_58 = arith.constant 0.000000e+00 : f32
    %47 = vector.broadcast %cst_58 : f32 to vector<128x64xf32>
    %c0_59 = arith.constant 0 : index
    %c0_60 = arith.constant 0 : index
    %c0_61 = arith.constant 0 : index
    %c0_62 = arith.constant 0 : index
    %48 = vector.load %arg11[%c0_59, %c0_60, %c0_61, %c0_62] : memref<2x10x10x16xf32, #tpu.memory_space<vmem>>, vector<2x8x8x16xf32>
    %49 = vector.shape_cast %48 : vector<2x8x8x16xf32> to vector<128x16xf32>
    %50 = arith.truncf %49 : vector<128x16xf32> to vector<128x16xbf16>
    %c0_63 = arith.constant 0 : index
    %c0_64 = arith.constant 0 : index
    %c0_65 = arith.constant 0 : index
    %51 = vector.load %arg2[%c0_63, %c0_64, %c0_65] : memref<9x16x64xbf16, #tpu.memory_space<vmem>>, vector<1x16x64xbf16>
    %52 = vector.shape_cast %51 : vector<1x16x64xbf16> to vector<16x64xbf16>
    %cst_66 = arith.constant dense<0.000000e+00> : vector<128x64xf32>
    %53 = tpu.matmul %50, %52, %cst_66 {dimension_numbers = #tpu.dot_dimension_numbers<[1], [0], [0], [1], [0, 0, 1, 1], [], []>} : vector<128x16xbf16>, vector<16x64xbf16>, vector<128x64xf32> -> vector<128x64xf32>
    %54 = arith.addf %46, %53 : vector<128x64xf32>
    %c0_67 = arith.constant 0 : index
    %c0_68 = arith.constant 0 : index
    %c0_69 = arith.constant 0 : index
    %c0_70 = arith.constant 0 : index
    %55 = vector.load %arg12[%c0_67, %c0_68, %c0_69, %c0_70] : memref<2x10x10x32xf32, #tpu.memory_space<vmem>>, vector<2x8x8x32xf32>
    %56 = vector.shape_cast %55 : vector<2x8x8x32xf32> to vector<128x32xf32>
    %57 = arith.truncf %56 : vector<128x32xf32> to vector<128x32xbf16>
    %c0_71 = arith.constant 0 : index
    %c0_72 = arith.constant 0 : index
    %c0_73 = arith.constant 0 : index
    %58 = vector.load %arg3[%c0_71, %c0_72, %c0_73] : memref<9x32x64xbf16, #tpu.memory_space<vmem>>, vector<1x32x64xbf16>
    %59 = vector.shape_cast %58 : vector<1x32x64xbf16> to vector<32x64xbf16>
    %cst_74 = arith.constant dense<0.000000e+00> : vector<128x64xf32>
    %60 = tpu.matmul %57, %59, %cst_74 {dimension_numbers = #tpu.dot_dimension_numbers<[1], [0], [0], [1], [0, 0, 1, 1], [], []>} : vector<128x32xbf16>, vector<32x64xbf16>, vector<128x64xf32> -> vector<128x64xf32>
    %61 = arith.addf %47, %60 : vector<128x64xf32>
    %c0_75 = arith.constant 0 : index
    %c0_76 = arith.constant 0 : index
    %c1_77 = arith.constant 1 : index
    %c0_78 = arith.constant 0 : index
    %62 = vector.load %arg11[%c0_75, %c0_76, %c1_77, %c0_78] : memref<2x10x10x16xf32, #tpu.memory_space<vmem>>, vector<2x8x8x16xf32>
    %63 = vector.shape_cast %62 : vector<2x8x8x16xf32> to vector<128x16xf32>
    %64 = arith.truncf %63 : vector<128x16xf32> to vector<128x16xbf16>
    %c1_79 = arith.constant 1 : index
    %c0_80 = arith.constant 0 : index
    %c0_81 = arith.constant 0 : index
    %65 = vector.load %arg2[%c1_79, %c0_80, %c0_81] : memref<9x16x64xbf16, #tpu.memory_space<vmem>>, vector<1x16x64xbf16>
    %66 = vector.shape_cast %65 : vector<1x16x64xbf16> to vector<16x64xbf16>
    %cst_82 = arith.constant dense<0.000000e+00> : vector<128x64xf32>
    %67 = tpu.matmul %64, %66, %cst_82 {dimension_numbers = #tpu.dot_dimension_numbers<[1], [0], [0], [1], [0, 0, 1, 1], [], []>} : vector<128x16xbf16>, vector<16x64xbf16>, vector<128x64xf32> -> vector<128x64xf32>
    %68 = arith.addf %54, %67 : vector<128x64xf32>
    %c0_83 = arith.constant 0 : index
    %c0_84 = arith.constant 0 : index
    %c1_85 = arith.constant 1 : index
    %c0_86 = arith.constant 0 : index
    %69 = vector.load %arg12[%c0_83, %c0_84, %c1_85, %c0_86] : memref<2x10x10x32xf32, #tpu.memory_space<vmem>>, vector<2x8x8x32xf32>
    %70 = vector.shape_cast %69 : vector<2x8x8x32xf32> to vector<128x32xf32>
    %71 = arith.truncf %70 : vector<128x32xf32> to vector<128x32xbf16>
    %c1_87 = arith.constant 1 : index
    %c0_88 = arith.constant 0 : index
    %c0_89 = arith.constant 0 : index
    %72 = vector.load %arg3[%c1_87, %c0_88, %c0_89] : memref<9x32x64xbf16, #tpu.memory_space<vmem>>, vector<1x32x64xbf16>
    %73 = vector.shape_cast %72 : vector<1x32x64xbf16> to vector<32x64xbf16>
    %cst_90 = arith.constant dense<0.000000e+00> : vector<128x64xf32>
    %74 = tpu.matmul %71, %73, %cst_90 {dimension_numbers = #tpu.dot_dimension_numbers<[1], [0], [0], [1], [0, 0, 1, 1], [], []>} : vector<128x32xbf16>, vector<32x64xbf16>, vector<128x64xf32> -> vector<128x64xf32>
    %75 = arith.addf %61, %74 : vector<128x64xf32>
    %c0_91 = arith.constant 0 : index
    %c0_92 = arith.constant 0 : index
    %c2 = arith.constant 2 : index
    %c0_93 = arith.constant 0 : index
    %76 = vector.load %arg11[%c0_91, %c0_92, %c2, %c0_93] : memref<2x10x10x16xf32, #tpu.memory_space<vmem>>, vector<2x8x8x16xf32>
    %77 = vector.shape_cast %76 : vector<2x8x8x16xf32> to vector<128x16xf32>
    %78 = arith.truncf %77 : vector<128x16xf32> to vector<128x16xbf16>
    %c2_94 = arith.constant 2 : index
    %c0_95 = arith.constant 0 : index
    %c0_96 = arith.constant 0 : index
    %79 = vector.load %arg2[%c2_94, %c0_95, %c0_96] : memref<9x16x64xbf16, #tpu.memory_space<vmem>>, vector<1x16x64xbf16>
    %80 = vector.shape_cast %79 : vector<1x16x64xbf16> to vector<16x64xbf16>
    %cst_97 = arith.constant dense<0.000000e+00> : vector<128x64xf32>
    %81 = tpu.matmul %78, %80, %cst_97 {dimension_numbers = #tpu.dot_dimension_numbers<[1], [0], [0], [1], [0, 0, 1, 1], [], []>} : vector<128x16xbf16>, vector<16x64xbf16>, vector<128x64xf32> -> vector<128x64xf32>
    %82 = arith.addf %68, %81 : vector<128x64xf32>
    %c0_98 = arith.constant 0 : index
    %c0_99 = arith.constant 0 : index
    %c2_100 = arith.constant 2 : index
    %c0_101 = arith.constant 0 : index
    %83 = vector.load %arg12[%c0_98, %c0_99, %c2_100, %c0_101] : memref<2x10x10x32xf32, #tpu.memory_space<vmem>>, vector<2x8x8x32xf32>
    %84 = vector.shape_cast %83 : vector<2x8x8x32xf32> to vector<128x32xf32>
    %85 = arith.truncf %84 : vector<128x32xf32> to vector<128x32xbf16>
    %c2_102 = arith.constant 2 : index
    %c0_103 = arith.constant 0 : index
    %c0_104 = arith.constant 0 : index
    %86 = vector.load %arg3[%c2_102, %c0_103, %c0_104] : memref<9x32x64xbf16, #tpu.memory_space<vmem>>, vector<1x32x64xbf16>
    %87 = vector.shape_cast %86 : vector<1x32x64xbf16> to vector<32x64xbf16>
    %cst_105 = arith.constant dense<0.000000e+00> : vector<128x64xf32>
    %88 = tpu.matmul %85, %87, %cst_105 {dimension_numbers = #tpu.dot_dimension_numbers<[1], [0], [0], [1], [0, 0, 1, 1], [], []>} : vector<128x32xbf16>, vector<32x64xbf16>, vector<128x64xf32> -> vector<128x64xf32>
    %89 = arith.addf %75, %88 : vector<128x64xf32>
    %c0_106 = arith.constant 0 : index
    %c1_107 = arith.constant 1 : index
    %c0_108 = arith.constant 0 : index
    %c0_109 = arith.constant 0 : index
    %90 = vector.load %arg11[%c0_106, %c1_107, %c0_108, %c0_109] : memref<2x10x10x16xf32, #tpu.memory_space<vmem>>, vector<2x8x8x16xf32>
    %91 = vector.shape_cast %90 : vector<2x8x8x16xf32> to vector<128x16xf32>
    %92 = arith.truncf %91 : vector<128x16xf32> to vector<128x16xbf16>
    %c3 = arith.constant 3 : index
    %c0_110 = arith.constant 0 : index
    %c0_111 = arith.constant 0 : index
    %93 = vector.load %arg2[%c3, %c0_110, %c0_111] : memref<9x16x64xbf16, #tpu.memory_space<vmem>>, vector<1x16x64xbf16>
    %94 = vector.shape_cast %93 : vector<1x16x64xbf16> to vector<16x64xbf16>
    %cst_112 = arith.constant dense<0.000000e+00> : vector<128x64xf32>
    %95 = tpu.matmul %92, %94, %cst_112 {dimension_numbers = #tpu.dot_dimension_numbers<[1], [0], [0], [1], [0, 0, 1, 1], [], []>} : vector<128x16xbf16>, vector<16x64xbf16>, vector<128x64xf32> -> vector<128x64xf32>
    %96 = arith.addf %82, %95 : vector<128x64xf32>
    %c0_113 = arith.constant 0 : index
    %c1_114 = arith.constant 1 : index
    %c0_115 = arith.constant 0 : index
    %c0_116 = arith.constant 0 : index
    %97 = vector.load %arg12[%c0_113, %c1_114, %c0_115, %c0_116] : memref<2x10x10x32xf32, #tpu.memory_space<vmem>>, vector<2x8x8x32xf32>
    %98 = vector.shape_cast %97 : vector<2x8x8x32xf32> to vector<128x32xf32>
    %99 = arith.truncf %98 : vector<128x32xf32> to vector<128x32xbf16>
    %c3_117 = arith.constant 3 : index
    %c0_118 = arith.constant 0 : index
    %c0_119 = arith.constant 0 : index
    %100 = vector.load %arg3[%c3_117, %c0_118, %c0_119] : memref<9x32x64xbf16, #tpu.memory_space<vmem>>, vector<1x32x64xbf16>
    %101 = vector.shape_cast %100 : vector<1x32x64xbf16> to vector<32x64xbf16>
    %cst_120 = arith.constant dense<0.000000e+00> : vector<128x64xf32>
    %102 = tpu.matmul %99, %101, %cst_120 {dimension_numbers = #tpu.dot_dimension_numbers<[1], [0], [0], [1], [0, 0, 1, 1], [], []>} : vector<128x32xbf16>, vector<32x64xbf16>, vector<128x64xf32> -> vector<128x64xf32>
    %103 = arith.addf %89, %102 : vector<128x64xf32>
    %c0_121 = arith.constant 0 : index
    %c1_122 = arith.constant 1 : index
    %c1_123 = arith.constant 1 : index
    %c0_124 = arith.constant 0 : index
    %104 = vector.load %arg11[%c0_121, %c1_122, %c1_123, %c0_124] : memref<2x10x10x16xf32, #tpu.memory_space<vmem>>, vector<2x8x8x16xf32>
    %105 = vector.shape_cast %104 : vector<2x8x8x16xf32> to vector<128x16xf32>
    %106 = arith.truncf %105 : vector<128x16xf32> to vector<128x16xbf16>
    %c4 = arith.constant 4 : index
    %c0_125 = arith.constant 0 : index
    %c0_126 = arith.constant 0 : index
    %107 = vector.load %arg2[%c4, %c0_125, %c0_126] : memref<9x16x64xbf16, #tpu.memory_space<vmem>>, vector<1x16x64xbf16>
    %108 = vector.shape_cast %107 : vector<1x16x64xbf16> to vector<16x64xbf16>
    %cst_127 = arith.constant dense<0.000000e+00> : vector<128x64xf32>
    %109 = tpu.matmul %106, %108, %cst_127 {dimension_numbers = #tpu.dot_dimension_numbers<[1], [0], [0], [1], [0, 0, 1, 1], [], []>} : vector<128x16xbf16>, vector<16x64xbf16>, vector<128x64xf32> -> vector<128x64xf32>
    %110 = arith.addf %96, %109 : vector<128x64xf32>
    %c0_128 = arith.constant 0 : index
    %c1_129 = arith.constant 1 : index
    %c1_130 = arith.constant 1 : index
    %c0_131 = arith.constant 0 : index
    %111 = vector.load %arg12[%c0_128, %c1_129, %c1_130, %c0_131] : memref<2x10x10x32xf32, #tpu.memory_space<vmem>>, vector<2x8x8x32xf32>
    %112 = vector.shape_cast %111 : vector<2x8x8x32xf32> to vector<128x32xf32>
    %113 = arith.truncf %112 : vector<128x32xf32> to vector<128x32xbf16>
    %c4_132 = arith.constant 4 : index
    %c0_133 = arith.constant 0 : index
    %c0_134 = arith.constant 0 : index
    %114 = vector.load %arg3[%c4_132, %c0_133, %c0_134] : memref<9x32x64xbf16, #tpu.memory_space<vmem>>, vector<1x32x64xbf16>
    %115 = vector.shape_cast %114 : vector<1x32x64xbf16> to vector<32x64xbf16>
    %cst_135 = arith.constant dense<0.000000e+00> : vector<128x64xf32>
    %116 = tpu.matmul %113, %115, %cst_135 {dimension_numbers = #tpu.dot_dimension_numbers<[1], [0], [0], [1], [0, 0, 1, 1], [], []>} : vector<128x32xbf16>, vector<32x64xbf16>, vector<128x64xf32> -> vector<128x64xf32>
    %117 = arith.addf %103, %116 : vector<128x64xf32>
    %c0_136 = arith.constant 0 : index
    %c1_137 = arith.constant 1 : index
    %c2_138 = arith.constant 2 : index
    %c0_139 = arith.constant 0 : index
    %118 = vector.load %arg11[%c0_136, %c1_137, %c2_138, %c0_139] : memref<2x10x10x16xf32, #tpu.memory_space<vmem>>, vector<2x8x8x16xf32>
    %119 = vector.shape_cast %118 : vector<2x8x8x16xf32> to vector<128x16xf32>
    %120 = arith.truncf %119 : vector<128x16xf32> to vector<128x16xbf16>
    %c5 = arith.constant 5 : index
    %c0_140 = arith.constant 0 : index
    %c0_141 = arith.constant 0 : index
    %121 = vector.load %arg2[%c5, %c0_140, %c0_141] : memref<9x16x64xbf16, #tpu.memory_space<vmem>>, vector<1x16x64xbf16>
    %122 = vector.shape_cast %121 : vector<1x16x64xbf16> to vector<16x64xbf16>
    %cst_142 = arith.constant dense<0.000000e+00> : vector<128x64xf32>
    %123 = tpu.matmul %120, %122, %cst_142 {dimension_numbers = #tpu.dot_dimension_numbers<[1], [0], [0], [1], [0, 0, 1, 1], [], []>} : vector<128x16xbf16>, vector<16x64xbf16>, vector<128x64xf32> -> vector<128x64xf32>
    %124 = arith.addf %110, %123 : vector<128x64xf32>
    %c0_143 = arith.constant 0 : index
    %c1_144 = arith.constant 1 : index
    %c2_145 = arith.constant 2 : index
    %c0_146 = arith.constant 0 : index
    %125 = vector.load %arg12[%c0_143, %c1_144, %c2_145, %c0_146] : memref<2x10x10x32xf32, #tpu.memory_space<vmem>>, vector<2x8x8x32xf32>
    %126 = vector.shape_cast %125 : vector<2x8x8x32xf32> to vector<128x32xf32>
    %127 = arith.truncf %126 : vector<128x32xf32> to vector<128x32xbf16>
    %c5_147 = arith.constant 5 : index
    %c0_148 = arith.constant 0 : index
    %c0_149 = arith.constant 0 : index
    %128 = vector.load %arg3[%c5_147, %c0_148, %c0_149] : memref<9x32x64xbf16, #tpu.memory_space<vmem>>, vector<1x32x64xbf16>
    %129 = vector.shape_cast %128 : vector<1x32x64xbf16> to vector<32x64xbf16>
    %cst_150 = arith.constant dense<0.000000e+00> : vector<128x64xf32>
    %130 = tpu.matmul %127, %129, %cst_150 {dimension_numbers = #tpu.dot_dimension_numbers<[1], [0], [0], [1], [0, 0, 1, 1], [], []>} : vector<128x32xbf16>, vector<32x64xbf16>, vector<128x64xf32> -> vector<128x64xf32>
    %131 = arith.addf %117, %130 : vector<128x64xf32>
    %c0_151 = arith.constant 0 : index
    %c2_152 = arith.constant 2 : index
    %c0_153 = arith.constant 0 : index
    %c0_154 = arith.constant 0 : index
    %132 = vector.load %arg11[%c0_151, %c2_152, %c0_153, %c0_154] : memref<2x10x10x16xf32, #tpu.memory_space<vmem>>, vector<2x8x8x16xf32>
    %133 = vector.shape_cast %132 : vector<2x8x8x16xf32> to vector<128x16xf32>
    %134 = arith.truncf %133 : vector<128x16xf32> to vector<128x16xbf16>
    %c6 = arith.constant 6 : index
    %c0_155 = arith.constant 0 : index
    %c0_156 = arith.constant 0 : index
    %135 = vector.load %arg2[%c6, %c0_155, %c0_156] : memref<9x16x64xbf16, #tpu.memory_space<vmem>>, vector<1x16x64xbf16>
    %136 = vector.shape_cast %135 : vector<1x16x64xbf16> to vector<16x64xbf16>
    %cst_157 = arith.constant dense<0.000000e+00> : vector<128x64xf32>
    %137 = tpu.matmul %134, %136, %cst_157 {dimension_numbers = #tpu.dot_dimension_numbers<[1], [0], [0], [1], [0, 0, 1, 1], [], []>} : vector<128x16xbf16>, vector<16x64xbf16>, vector<128x64xf32> -> vector<128x64xf32>
    %138 = arith.addf %124, %137 : vector<128x64xf32>
    %c0_158 = arith.constant 0 : index
    %c2_159 = arith.constant 2 : index
    %c0_160 = arith.constant 0 : index
    %c0_161 = arith.constant 0 : index
    %139 = vector.load %arg12[%c0_158, %c2_159, %c0_160, %c0_161] : memref<2x10x10x32xf32, #tpu.memory_space<vmem>>, vector<2x8x8x32xf32>
    %140 = vector.shape_cast %139 : vector<2x8x8x32xf32> to vector<128x32xf32>
    %141 = arith.truncf %140 : vector<128x32xf32> to vector<128x32xbf16>
    %c6_162 = arith.constant 6 : index
    %c0_163 = arith.constant 0 : index
    %c0_164 = arith.constant 0 : index
    %142 = vector.load %arg3[%c6_162, %c0_163, %c0_164] : memref<9x32x64xbf16, #tpu.memory_space<vmem>>, vector<1x32x64xbf16>
    %143 = vector.shape_cast %142 : vector<1x32x64xbf16> to vector<32x64xbf16>
    %cst_165 = arith.constant dense<0.000000e+00> : vector<128x64xf32>
    %144 = tpu.matmul %141, %143, %cst_165 {dimension_numbers = #tpu.dot_dimension_numbers<[1], [0], [0], [1], [0, 0, 1, 1], [], []>} : vector<128x32xbf16>, vector<32x64xbf16>, vector<128x64xf32> -> vector<128x64xf32>
    %145 = arith.addf %131, %144 : vector<128x64xf32>
    %c0_166 = arith.constant 0 : index
    %c2_167 = arith.constant 2 : index
    %c1_168 = arith.constant 1 : index
    %c0_169 = arith.constant 0 : index
    %146 = vector.load %arg11[%c0_166, %c2_167, %c1_168, %c0_169] : memref<2x10x10x16xf32, #tpu.memory_space<vmem>>, vector<2x8x8x16xf32>
    %147 = vector.shape_cast %146 : vector<2x8x8x16xf32> to vector<128x16xf32>
    %148 = arith.truncf %147 : vector<128x16xf32> to vector<128x16xbf16>
    %c7 = arith.constant 7 : index
    %c0_170 = arith.constant 0 : index
    %c0_171 = arith.constant 0 : index
    %149 = vector.load %arg2[%c7, %c0_170, %c0_171] : memref<9x16x64xbf16, #tpu.memory_space<vmem>>, vector<1x16x64xbf16>
    %150 = vector.shape_cast %149 : vector<1x16x64xbf16> to vector<16x64xbf16>
    %cst_172 = arith.constant dense<0.000000e+00> : vector<128x64xf32>
    %151 = tpu.matmul %148, %150, %cst_172 {dimension_numbers = #tpu.dot_dimension_numbers<[1], [0], [0], [1], [0, 0, 1, 1], [], []>} : vector<128x16xbf16>, vector<16x64xbf16>, vector<128x64xf32> -> vector<128x64xf32>
    %152 = arith.addf %138, %151 : vector<128x64xf32>
    %c0_173 = arith.constant 0 : index
    %c2_174 = arith.constant 2 : index
    %c1_175 = arith.constant 1 : index
    %c0_176 = arith.constant 0 : index
    %153 = vector.load %arg12[%c0_173, %c2_174, %c1_175, %c0_176] : memref<2x10x10x32xf32, #tpu.memory_space<vmem>>, vector<2x8x8x32xf32>
    %154 = vector.shape_cast %153 : vector<2x8x8x32xf32> to vector<128x32xf32>
    %155 = arith.truncf %154 : vector<128x32xf32> to vector<128x32xbf16>
    %c7_177 = arith.constant 7 : index
    %c0_178 = arith.constant 0 : index
    %c0_179 = arith.constant 0 : index
    %156 = vector.load %arg3[%c7_177, %c0_178, %c0_179] : memref<9x32x64xbf16, #tpu.memory_space<vmem>>, vector<1x32x64xbf16>
    %157 = vector.shape_cast %156 : vector<1x32x64xbf16> to vector<32x64xbf16>
    %cst_180 = arith.constant dense<0.000000e+00> : vector<128x64xf32>
    %158 = tpu.matmul %155, %157, %cst_180 {dimension_numbers = #tpu.dot_dimension_numbers<[1], [0], [0], [1], [0, 0, 1, 1], [], []>} : vector<128x32xbf16>, vector<32x64xbf16>, vector<128x64xf32> -> vector<128x64xf32>
    %159 = arith.addf %145, %158 : vector<128x64xf32>
    %c0_181 = arith.constant 0 : index
    %c2_182 = arith.constant 2 : index
    %c2_183 = arith.constant 2 : index
    %c0_184 = arith.constant 0 : index
    %160 = vector.load %arg11[%c0_181, %c2_182, %c2_183, %c0_184] : memref<2x10x10x16xf32, #tpu.memory_space<vmem>>, vector<2x8x8x16xf32>
    %161 = vector.shape_cast %160 : vector<2x8x8x16xf32> to vector<128x16xf32>
    %162 = arith.truncf %161 : vector<128x16xf32> to vector<128x16xbf16>
    %c8 = arith.constant 8 : index
    %c0_185 = arith.constant 0 : index
    %c0_186 = arith.constant 0 : index
    %163 = vector.load %arg2[%c8, %c0_185, %c0_186] : memref<9x16x64xbf16, #tpu.memory_space<vmem>>, vector<1x16x64xbf16>
    %164 = vector.shape_cast %163 : vector<1x16x64xbf16> to vector<16x64xbf16>
    %cst_187 = arith.constant dense<0.000000e+00> : vector<128x64xf32>
    %165 = tpu.matmul %162, %164, %cst_187 {dimension_numbers = #tpu.dot_dimension_numbers<[1], [0], [0], [1], [0, 0, 1, 1], [], []>} : vector<128x16xbf16>, vector<16x64xbf16>, vector<128x64xf32> -> vector<128x64xf32>
    %166 = arith.addf %152, %165 : vector<128x64xf32>
    %c0_188 = arith.constant 0 : index
    %c2_189 = arith.constant 2 : index
    %c2_190 = arith.constant 2 : index
    %c0_191 = arith.constant 0 : index
    %167 = vector.load %arg12[%c0_188, %c2_189, %c2_190, %c0_191] : memref<2x10x10x32xf32, #tpu.memory_space<vmem>>, vector<2x8x8x32xf32>
    %168 = vector.shape_cast %167 : vector<2x8x8x32xf32> to vector<128x32xf32>
    %169 = arith.truncf %168 : vector<128x32xf32> to vector<128x32xbf16>
    %c8_192 = arith.constant 8 : index
    %c0_193 = arith.constant 0 : index
    %c0_194 = arith.constant 0 : index
    %170 = vector.load %arg3[%c8_192, %c0_193, %c0_194] : memref<9x32x64xbf16, #tpu.memory_space<vmem>>, vector<1x32x64xbf16>
    %171 = vector.shape_cast %170 : vector<1x32x64xbf16> to vector<32x64xbf16>
    %cst_195 = arith.constant dense<0.000000e+00> : vector<128x64xf32>
    %172 = tpu.matmul %169, %171, %cst_195 {dimension_numbers = #tpu.dot_dimension_numbers<[1], [0], [0], [1], [0, 0, 1, 1], [], []>} : vector<128x32xbf16>, vector<32x64xbf16>, vector<128x64xf32> -> vector<128x64xf32>
    %173 = arith.addf %159, %172 : vector<128x64xf32>
    %cst_196 = arith.constant dense<0.000000e+00> : vector<64xf32>
    %174 = vector.multi_reduction <add>, %166, %cst_196 [0] : vector<128x64xf32> to vector<64xf32>
    %175 = vector.shape_cast %174 : vector<64xf32> to vector<1x64xf32>
    %176 = vector.extract_strided_slice %175 {offsets = [0, 0], sizes = [1, 16], strides = [1, 1]} : vector<1x64xf32> to vector<1x16xf32>
    %177 = vector.extract_strided_slice %175 {offsets = [0, 16], sizes = [1, 16], strides = [1, 1]} : vector<1x64xf32> to vector<1x16xf32>
    %178 = arith.addf %176, %177 : vector<1x16xf32>
    %179 = vector.extract_strided_slice %175 {offsets = [0, 32], sizes = [1, 16], strides = [1, 1]} : vector<1x64xf32> to vector<1x16xf32>
    %180 = arith.addf %178, %179 : vector<1x16xf32>
    %181 = vector.extract_strided_slice %175 {offsets = [0, 48], sizes = [1, 16], strides = [1, 1]} : vector<1x64xf32> to vector<1x16xf32>
    %182 = arith.addf %180, %181 : vector<1x16xf32>
    %cst_197 = arith.constant 5.120000e+02 : f32
    %183 = vector.broadcast %cst_197 : f32 to vector<1x16xf32>
    %184 = arith.divf %182, %183 : vector<1x16xf32>
    %185 = arith.mulf %166, %166 : vector<128x64xf32>
    %cst_198 = arith.constant dense<0.000000e+00> : vector<64xf32>
    %186 = vector.multi_reduction <add>, %185, %cst_198 [0] : vector<128x64xf32> to vector<64xf32>
    %187 = vector.shape_cast %186 : vector<64xf32> to vector<1x64xf32>
    %188 = vector.extract_strided_slice %187 {offsets = [0, 0], sizes = [1, 16], strides = [1, 1]} : vector<1x64xf32> to vector<1x16xf32>
    %189 = vector.extract_strided_slice %187 {offsets = [0, 16], sizes = [1, 16], strides = [1, 1]} : vector<1x64xf32> to vector<1x16xf32>
    %190 = arith.addf %188, %189 : vector<1x16xf32>
    %191 = vector.extract_strided_slice %187 {offsets = [0, 32], sizes = [1, 16], strides = [1, 1]} : vector<1x64xf32> to vector<1x16xf32>
    %192 = arith.addf %190, %191 : vector<1x16xf32>
    %193 = vector.extract_strided_slice %187 {offsets = [0, 48], sizes = [1, 16], strides = [1, 1]} : vector<1x64xf32> to vector<1x16xf32>
    %194 = arith.addf %192, %193 : vector<1x16xf32>
    %cst_199 = arith.constant 5.120000e+02 : f32
    %195 = vector.broadcast %cst_199 : f32 to vector<1x16xf32>
    %196 = arith.divf %194, %195 : vector<1x16xf32>
    %197 = arith.mulf %184, %184 : vector<1x16xf32>
    %198 = arith.subf %196, %197 : vector<1x16xf32>
    %cst_200 = arith.constant 9.99999974E-6 : f32
    %199 = vector.broadcast %cst_200 : f32 to vector<1x16xf32>
    %200 = arith.addf %198, %199 : vector<1x16xf32>
    %201 = math.rsqrt %200 : vector<1x16xf32>
    %c0_201 = arith.constant 0 : index
    %c0_202 = arith.constant 0 : index
    %202 = vector.load %arg6[%c0_201, %c0_202] : memref<1x16xf32, #tpu.memory_space<vmem>>, vector<1x16xf32>
    %203 = arith.mulf %202, %201 : vector<1x16xf32>
    %c0_203 = arith.constant 0 : index
    %c0_204 = arith.constant 0 : index
    %204 = vector.load %arg7[%c0_203, %c0_204] : memref<1x16xf32, #tpu.memory_space<vmem>>, vector<1x16xf32>
    %205 = arith.mulf %184, %203 : vector<1x16xf32>
    %206 = arith.subf %204, %205 : vector<1x16xf32>
    %207 = tpu.concatenate %203, %203, %203, %203 in 1 : vector<1x16xf32>, vector<1x16xf32>, vector<1x16xf32>, vector<1x16xf32> -> vector<1x64xf32>
    %208 = tpu.concatenate %206, %206, %206, %206 in 1 : vector<1x16xf32>, vector<1x16xf32>, vector<1x16xf32>, vector<1x16xf32> -> vector<1x64xf32>
    %cst_205 = arith.constant dense<0.000000e+00> : vector<64xf32>
    %209 = vector.multi_reduction <add>, %173, %cst_205 [0] : vector<128x64xf32> to vector<64xf32>
    %210 = vector.shape_cast %209 : vector<64xf32> to vector<1x64xf32>
    %211 = vector.extract_strided_slice %210 {offsets = [0, 0], sizes = [1, 16], strides = [1, 1]} : vector<1x64xf32> to vector<1x16xf32>
    %212 = vector.extract_strided_slice %210 {offsets = [0, 16], sizes = [1, 16], strides = [1, 1]} : vector<1x64xf32> to vector<1x16xf32>
    %213 = arith.addf %211, %212 : vector<1x16xf32>
    %214 = vector.extract_strided_slice %210 {offsets = [0, 32], sizes = [1, 16], strides = [1, 1]} : vector<1x64xf32> to vector<1x16xf32>
    %215 = arith.addf %213, %214 : vector<1x16xf32>
    %216 = vector.extract_strided_slice %210 {offsets = [0, 48], sizes = [1, 16], strides = [1, 1]} : vector<1x64xf32> to vector<1x16xf32>
    %217 = arith.addf %215, %216 : vector<1x16xf32>
    %cst_206 = arith.constant 5.120000e+02 : f32
    %218 = vector.broadcast %cst_206 : f32 to vector<1x16xf32>
    %219 = arith.divf %217, %218 : vector<1x16xf32>
    %220 = arith.mulf %173, %173 : vector<128x64xf32>
    %cst_207 = arith.constant dense<0.000000e+00> : vector<64xf32>
    %221 = vector.multi_reduction <add>, %220, %cst_207 [0] : vector<128x64xf32> to vector<64xf32>
    %222 = vector.shape_cast %221 : vector<64xf32> to vector<1x64xf32>
    %223 = vector.extract_strided_slice %222 {offsets = [0, 0], sizes = [1, 16], strides = [1, 1]} : vector<1x64xf32> to vector<1x16xf32>
    %224 = vector.extract_strided_slice %222 {offsets = [0, 16], sizes = [1, 16], strides = [1, 1]} : vector<1x64xf32> to vector<1x16xf32>
    %225 = arith.addf %223, %224 : vector<1x16xf32>
    %226 = vector.extract_strided_slice %222 {offsets = [0, 32], sizes = [1, 16], strides = [1, 1]} : vector<1x64xf32> to vector<1x16xf32>
    %227 = arith.addf %225, %226 : vector<1x16xf32>
    %228 = vector.extract_strided_slice %222 {offsets = [0, 48], sizes = [1, 16], strides = [1, 1]} : vector<1x64xf32> to vector<1x16xf32>
    %229 = arith.addf %227, %228 : vector<1x16xf32>
    %cst_208 = arith.constant 5.120000e+02 : f32
    %230 = vector.broadcast %cst_208 : f32 to vector<1x16xf32>
    %231 = arith.divf %229, %230 : vector<1x16xf32>
    %232 = arith.mulf %219, %219 : vector<1x16xf32>
    %233 = arith.subf %231, %232 : vector<1x16xf32>
    %cst_209 = arith.constant 9.99999974E-6 : f32
    %234 = vector.broadcast %cst_209 : f32 to vector<1x16xf32>
    %235 = arith.addf %233, %234 : vector<1x16xf32>
    %236 = math.rsqrt %235 : vector<1x16xf32>
    %c0_210 = arith.constant 0 : index
    %c0_211 = arith.constant 0 : index
    %237 = vector.load %arg8[%c0_210, %c0_211] : memref<1x16xf32, #tpu.memory_space<vmem>>, vector<1x16xf32>
    %238 = arith.mulf %237, %236 : vector<1x16xf32>
    %c0_212 = arith.constant 0 : index
    %c0_213 = arith.constant 0 : index
    %239 = vector.load %arg9[%c0_212, %c0_213] : memref<1x16xf32, #tpu.memory_space<vmem>>, vector<1x16xf32>
    %240 = arith.mulf %219, %238 : vector<1x16xf32>
    %241 = arith.subf %239, %240 : vector<1x16xf32>
    %242 = tpu.concatenate %238, %238, %238, %238 in 1 : vector<1x16xf32>, vector<1x16xf32>, vector<1x16xf32>, vector<1x16xf32> -> vector<1x64xf32>
    %243 = tpu.concatenate %241, %241, %241, %241 in 1 : vector<1x16xf32>, vector<1x16xf32>, vector<1x16xf32>, vector<1x16xf32> -> vector<1x64xf32>
    %244 = vector.broadcast %207 : vector<1x64xf32> to vector<128x64xf32>
    %245 = arith.mulf %166, %244 : vector<128x64xf32>
    %246 = vector.broadcast %208 : vector<1x64xf32> to vector<128x64xf32>
    %247 = arith.addf %245, %246 : vector<128x64xf32>
    %248 = vector.broadcast %242 : vector<1x64xf32> to vector<128x64xf32>
    %249 = arith.mulf %173, %248 : vector<128x64xf32>
    %250 = arith.addf %247, %249 : vector<128x64xf32>
    %251 = vector.broadcast %243 : vector<1x64xf32> to vector<128x64xf32>
    %252 = arith.addf %250, %251 : vector<128x64xf32>
    %cst_214 = arith.constant 0.000000e+00 : f32
    %253 = vector.broadcast %cst_214 : f32 to vector<128x64xf32>
    %254 = arith.maximumf %252, %253 : vector<128x64xf32>
    %c0_215 = arith.constant 0 : index
    %c0_216 = arith.constant 0 : index
    %255 = vector.load %arg10[%c0_215, %c0_216] : memref<128x64xf32, #tpu.memory_space<vmem>>, vector<128x64xf32>
    tpu.vector_store %arg10[%c0_215, %c0_216], %254 {strides = array<i32>} : memref<128x64xf32, #tpu.memory_space<vmem>>, vector<128x64xf32>,
    return
  }
}

</mosaic_0001>

<bundles_post_ra>
// kernel: deconv_bottleneck_forward.1
= control target key start
LH: loop header
LB: loop body
LE: loop exit
PB: predicated region body
PF: predicated region fallthrough
CT: control target
= control target key end

     0   :  { %15 = vsyncpa [#allocation5], 0  ;;  %s6778_s0 = inlined_call_operand.hbm [shape: f32[2,8,8,32], index: 0, kind: input, shape index: {}]   ;;  %s6779_s1 = inlined_call_operand.vmem [shape: bf16[32,16], index: 1, kind: input, shape index: {}]   ;;  %s6780_s2 = inlined_call_operand.hbm [shape: bf16[9,16,64], index: 2, kind: input, shape index: {}]   ;;  %s6781_s3 = inlined_call_operand.hbm [shape: bf16[9,32,64], index: 3, kind: input, shape index: {}]   ;;  %s6782_s4 = inlined_call_operand.vmem [shape: f32[1,16], index: 4, kind: input, shape index: {}]   ;;  %s6783_s5 = inlined_call_operand.vmem [shape: f32[1,16], index: 5, kind: input, shape index: {}]   ;;  %s6784_s6 = inlined_call_operand.vmem [shape: f32[1,16], index: 6, kind: input, shape index: {}]   ;;  %s6785_s7 = inlined_call_operand.vmem [shape: f32[1,16], index: 7, kind: input, shape index: {}]   ;;  %s6786_s8 = inlined_call_operand.vmem [shape: f32[1,16], index: 8, kind: input, shape index: {}]   ;;  %s6787_s9 = inlined_call_operand.vmem [shape: f32[1,16], index: 9, kind: input, shape index: {}]   ;;  %s6788_s10 = inlined_call_operand.vmem [shape: f32[128,64], index: 10, kind: output, shape index: {}]  }
   0x1   :  { %16 = vsyncpa [#allocation7], 0  ;;  %s5199_s13 = smov [#allocation6]   ;;  %s5129_s17 = scalar_lea.hbm %s6780_s2, 1152 }
   0x2   :  { %s36_s14 = sshll.u32 %s5199_s13, 4  ;;  %p5130_p0 = scmp.ne.s32.totalorder %s6780_s2, %s5129_s17  ;;  %s37_s14 = int_to_ptr.vmem [resolvable:$true] %s36_s14 }
   0x3   :  { %p5133_p1 = scmp.lt.u32.totalorder %s5129_s17, %s6780_s2 }
   0x5   :  { %p5135_p2 = pnand %p5133_p1, %p5130_p0 }
   0x7   :  { %5138 = shalt.err (!%p5135_p2)
}
   0x8   :  { %s5139_s22 = scalar_lea.vmem %s37_s14, 1152  ;;  %p5144_p4 = scmp.lt.s32.totalorder %s37_s14, %s37_s14 }
   0x9   :  { %p5140_p3 = scmp.ne.s32.totalorder %s37_s14, %s5139_s22  ;;  %p5145_p5 = scmp.lt.s32.totalorder %s5139_s22, %s5139_s22 }
   0xb   :  { %p5146_p6 = por %p5145_p5, %p5144_p4 }
   0xd   :  { %p5147_p7 = pnand %p5146_p6, %p5140_p3 }
   0xf   :  { %5150 = shalt.err (!%p5147_p7)
}
  0x10   :  { %s5200_s23 = smov 64   ;;  %s5201_s24 = smov 4  }
  0x11   :  { %42 = dma.hbm_to_vmem [thread:$0]  %s6780_s2, 1152, %s37_s14, [#allocation7], %s5200_s23, %s5200_s23, %s5201_s24  }
  0x12   :  { %s5202_s27 = smov [#allocation4]   ;;  %s5151_s11 = scalar_lea.hbm %s6778_s0, 2048 }
  0x13   :  { %s22_s28 = sshll.u32 %s5202_s27, 4  ;;  %p5152_p8 = scmp.ne.s32.totalorder %s6778_s0, %s5151_s11  ;;  %s23_s28 = int_to_ptr.vmem [resolvable:$true] %s22_s28 }
  0x14   :  { %p5155_p9 = scmp.lt.u32.totalorder %s5151_s11, %s6778_s0 }
  0x16   :  { %p5157_p10 = pnand %p5155_p9, %p5152_p8 }
  0x18   :  { %5160 = shalt.err (!%p5157_p10)
}
  0x19   :  { %s5161_s17 = scalar_lea.vmem %s23_s28, 2048  ;;  %p5166_p12 = scmp.lt.s32.totalorder %s23_s28, %s23_s28 }
  0x1a   :  { %p5162_p11 = scmp.ne.s32.totalorder %s23_s28, %s5161_s17  ;;  %p5167_p13 = scmp.lt.s32.totalorder %s5161_s17, %s5161_s17 }
  0x1c   :  { %p5168_p0 = por %p5167_p13, %p5166_p12 }
  0x1e   :  { %p5169_p1 = pnand %p5168_p0, %p5162_p11 }
  0x20   :  { %5172 = shalt.err (!%p5169_p1)
}
  0x21   :  { %s5203_s2 = smov 128   ;;  %s5204_s14 = smov 8  }
  0x22   :  { %28 = dma.hbm_to_vmem [thread:$0]  %s6778_s0, 2048, %s23_s28, [#allocation5], %s5203_s2, %s5203_s2, %s5204_s14  }
  0x23   :  { %s5205_s20 = smov [#allocation8]   ;;  %s5173_s26 = scalar_lea.hbm %s6781_s3, 2304 }
  0x24   :  { %s48_s21 = sshll.u32 %s5205_s20, 4  ;;  %p5174_p2 = scmp.ne.s32.totalorder %s6781_s3, %s5173_s26  ;;  %s49_s21 = int_to_ptr.vmem [resolvable:$true] %s48_s21 }
  0x25   :  { %p5177_p3 = scmp.lt.u32.totalorder %s5173_s26, %s6781_s3 }
  0x27   :  { %p5179_p4 = pnand %p5177_p3, %p5174_p2 }
  0x29   :  { %5182 = shalt.err (!%p5179_p4)
}
  0x2a   :  { %s5183_s12 = scalar_lea.vmem %s49_s21, 2304  ;;  %p5188_p6 = scmp.lt.s32.totalorder %s49_s21, %s49_s21 }
  0x2b   :  { %p5184_p5 = scmp.ne.s32.totalorder %s49_s21, %s5183_s12  ;;  %p5189_p7 = scmp.lt.s32.totalorder %s5183_s12, %s5183_s12 }
  0x2d   :  { %p5190_p8 = por %p5189_p7, %p5188_p6 }
  0x2f   :  { %p5191_p9 = pnand %p5190_p8, %p5184_p5 }
  0x31   :  { %5194 = shalt.err (!%p5191_p9)
}
  0x32   :  { %54 = dma.hbm_to_vmem [thread:$0]  %s6781_s3, 2304, %s49_s21, [#allocation7], %s5200_s23, %s5200_s23, %s5201_s24  }
  0x33   :  { %5195 = dma.done.wait [#allocation5], 2048  }
  0x34   :  { %5196 = vsyncadd [#allocation5], 4294965248 }
  0x35   :  { %5197 = dma.done.wait [#allocation7], 3456  }
  0x36   :  { %5198 = vsyncadd [#allocation7], 4294963840  ;;  %vm117_vm0 = vcmask 261120   ;;  %vm483_vm1 = vcmask 254976   ;;  %vm492_vm2 = vcmask 253952   ;;  %v6789_v0 = vmov 0.0  }
  0x37   :  { %482 = vst.msk [vmem:[#allocation3] sm:$0xff] %vm117_vm0, %v6789_v0  ;;  %485 = vst.msk [vmem:[#allocation3 + $0xa0] sm:$0xff] %vm117_vm0, %v6789_v0  ;;  %v5094_v1 = vld [vmem:[%s6779_s1] sm:$0xff]   ;;  %v5095_v2 = vld [vmem:[%s6779_s1 + $0x8] sm:$0xff]   ;;  %vm239_vm3 = vcmask 130048   ;;  %vm432_vm4 = vcmask 123904  }
  0x38   :  { %484 = vst.msk [vmem:[#allocation3 + $0x8] sm:$0x3] %vm483_vm1, %v6789_v0  ;;  %486 = vst.msk [vmem:[#allocation3 + $0xa8] sm:$0x3] %vm483_vm1, %v6789_v0  ;;  %4458 = vmatprep.subr.bf16.mxu0 %v5094_v1  ;;  %v77_v3 = vld [vmem:[#allocation4] sm:$0xff]  ;;  %v78_v4 = vld [vmem:[#allocation4 + $0x8] sm:$0xff]  ;;  %4820 = vmatprep.subr.bf16.mxu1 %v5094_v1 }
  0x39   :  { %488 = vst.msk [vmem:[#allocation3 + $0x90] sm:$0xff] %vm117_vm0, %v6789_v0  ;;  %490 = vst.msk [vmem:[#allocation3 + $0x130] sm:$0xff] %vm117_vm0, %v6789_v0  ;;  %v79_v5 = vld [vmem:[#allocation4 + $0x10] sm:$0xff]  ;;  %4459 = vmatpush3.bf16.msra.mxu0 %v5094_v1  ;;  %v93_v6 = vpack.c.bf16 %v78_v4, %v77_v3  ;;  %v80_v7 = vld [vmem:[#allocation4 + $0x18] sm:$0xff]  ;;  %4822 = vmatpush3.bf16.msra.mxu1 %v5094_v1  ;;  %vm441_vm5 = vcmask 122880   ;;  %vm3635_vm6 = vcmask 523264  }
  0x3a   :  { %489 = vst.msk [vmem:[#allocation3 + $0x98] sm:$0x3] %vm483_vm1, %v6789_v0  ;;  %491 = vst.msk [vmem:[#allocation3 + $0x138] sm:$0x3] %vm483_vm1, %v6789_v0  ;;  %v81_v8 = vld [vmem:[#allocation4 + $0x20] sm:$0xff]  ;;  %v82_v9 = vld [vmem:[#allocation4 + $0x28] sm:$0xff]  ;;  %4460 = vmatprep.subr.bf16.mxu0 %v5095_v2  ;;  %4821 = vmatprep.subr.bf16.mxu1 %v5095_v2  ;;  %v94_v14 = vpack.c.bf16 %v80_v7, %v79_v5 }
  0x3b   :  { %494 = vst.msk [vmem:[#allocation3 + $0x10] sm:$0x1] %vm492_vm2, %v6789_v0  ;;  %495 = vst.msk [vmem:[#allocation3 + $0x20] sm:$0x1] %vm492_vm2, %v6789_v0  ;;  %v83_v10 = vld [vmem:[#allocation4 + $0x30] sm:$0xff]  ;;  %v84_v11 = vld [vmem:[#allocation4 + $0x38] sm:$0xff]  ;;  %4462 = vmatprep.mubr.msk.bf16.mxu0 %vm117_vm0, %v93_v6  ;;  %v95_v16 = vpack.c.bf16 %v82_v9, %v81_v8 }
  0x3c   :  { %496 = vst.msk [vmem:[#allocation3 + $0x30] sm:$0x1] %vm492_vm2, %v6789_v0  ;;  %497 = vst.msk [vmem:[#allocation3 + $0x40] sm:$0x1] %vm492_vm2, %v6789_v0  ;;  %v5096_v12 = vld [vmem:[#allocation8 + $0x10] sm:$0xff]   ;;  %v85_v13 = vld [vmem:[#allocation4 + $0x40] sm:$0xff]  ;;  %v96_v30 = vpack.c.bf16 %v84_v11, %v83_v10 }
  0x3d   :  { %498 = vst.msk [vmem:[#allocation3 + $0x50] sm:$0x1] %vm492_vm2, %v6789_v0  ;;  %499 = vst.msk [vmem:[#allocation3 + $0x60] sm:$0x1] %vm492_vm2, %v6789_v0  ;;  %v86_v15 = vld [vmem:[#allocation4 + $0x48] sm:$0xff]  ;;  %4461 = vmatpush3.bf16.msra.mxu0 %v5095_v2  ;;  %4823 = vmatpush3.bf16.msra.mxu1 %v5095_v2  ;;  %v87_v18 = vld [vmem:[#allocation4 + $0x50] sm:$0xff] }
  0x3e   :  { %500 = vst.msk [vmem:[#allocation3 + $0x70] sm:$0x1] %vm492_vm2, %v6789_v0  ;;  %501 = vst.msk [vmem:[#allocation3 + $0x80] sm:$0x1] %vm492_vm2, %v6789_v0  ;;  %v97_v17 = vpack.c.bf16 %v86_v15, %v85_v13  ;;  %v88_v19 = vld [vmem:[#allocation4 + $0x58] sm:$0xff]  ;;  %4514 = vmatprep.subr.bf16.mxu0 %v5096_v12  ;;  %v5097_v20 = vld [vmem:[#allocation8 + $0x18] sm:$0xff]  }
  0x3f   :  { %504 = vst.msk [vmem:[#allocation3 + $0xb0] sm:$0x1] %vm492_vm2, %v6789_v0  ;;  %505 = vst.msk [vmem:[#allocation3 + $0xc0] sm:$0x1] %vm492_vm2, %v6789_v0  ;;  %v98_v21 = vpack.c.bf16 %v88_v19, %v87_v18  ;;  %v89_v22 = vld [vmem:[#allocation4 + $0x60] sm:$0xff]  ;;  %v90_v23 = vld [vmem:[#allocation4 + $0x68] sm:$0xff] }
  0x40   :  { %506 = vst.msk [vmem:[#allocation3 + $0xd0] sm:$0x1] %vm492_vm2, %v6789_v0  ;;  %507 = vst.msk [vmem:[#allocation3 + $0xe0] sm:$0x1] %vm492_vm2, %v6789_v0  ;;  %4470 = vmatprep.mubr.msk.bf16.mxu1 %vm117_vm0, %v97_v17  ;;  %v99_v24 = vpack.c.bf16 %v90_v23, %v89_v22  ;;  %v91_v25 = vld [vmem:[#allocation4 + $0x70] sm:$0xff]  ;;  %v92_v26 = vld [vmem:[#allocation4 + $0x78] sm:$0xff]  ;;  %4463 = vmatmul.mubr.msk.bf16.vlgmr.msra.gmra.mrb[0].mxu0 %vm117_vm0, %v94_v14 }
  0x41   :  { %508 = vst.msk [vmem:[#allocation3 + $0xf0] sm:$0x1] %vm492_vm2, %v6789_v0  ;;  %509 = vst.msk [vmem:[#allocation3 + $0x100] sm:$0x1] %vm492_vm2, %v6789_v0  ;;  %4471 = vmatmul.mubr.msk.bf16.vlgmr.msra.gmra.mrb[0].mxu1 %vm117_vm0, %v98_v21  ;;  %4466 = vmatprep.mubr.msk.bf16.mxu0 %vm117_vm0, %v95_v16  ;;  %v902_v27 = vld [vmem:[#allocation3 + $0x1] sm:$0xff]  ;;  %v100_v31 = vpack.c.bf16 %v92_v26, %v91_v25  ;;  %v5099_v41 = vld [vmem:[#allocation8 + $0x8] sm:$0xff]  }
  0x42   :  { %510 = vst.msk [vmem:[#allocation3 + $0x110] sm:$0x1] %vm492_vm2, %v6789_v0  ;;  %511 = vst.msk [vmem:[#allocation3 + $0x120] sm:$0x1] %vm492_vm2, %v6789_v0  ;;  %4515 = vmatpush3.bf16.msra.mxu0 %v5096_v12  ;;  %4474 = vmatprep.mubr.msk.bf16.mxu1 %vm117_vm0, %v99_v24  ;;  %v5098_v29 = vld [vmem:[#allocation8] sm:$0xff]   ;;  %v5101_v14 = vld [vmem:[#allocation8 + $0x28] sm:$0xff]  }
  0x43   :  { %514 = vst.msk [vmem:[#allocation3 + $0x19] sm:$0x1] %vm492_vm2, %v6789_v0  ;;  %515 = vst.msk [vmem:[#allocation3 + $0x29] sm:$0x1] %vm492_vm2, %v6789_v0  ;;  %4516 = vmatprep.subr.bf16.mxu0 %v5097_v20  ;;  %v910_v45 = vld [vmem:[#allocation3 + $0xa1] sm:$0xff]  ;;  %s5209_s2 = smov 80  }
  0x44   :  { %516 = vst.msk [vmem:[#allocation3 + $0x39] sm:$0x1] %vm492_vm2, %v6789_v0  ;;  %517 = vst.msk [vmem:[#allocation3 + $0x49] sm:$0x1] %vm492_vm2, %v6789_v0  ;;  %v5100_v47 = vld [vmem:[#allocation8 + $0x20] sm:$0xff]   ;;  %v5103_v61 = vld [vmem:[#allocation8 + $0x38] sm:$0xff]  }
  0x45   :  { %518 = vst.msk [vmem:[#allocation3 + $0x59] sm:$0x1] %vm492_vm2, %v6789_v0  ;;  %519 = vst.msk [vmem:[#allocation3 + $0x69] sm:$0x1] %vm492_vm2, %v6789_v0  ;;  %s5210_s21 = smov 32   ;;  %s5211_s27 = smov 16  }
  0x46   :  { %520 = vst.msk [vmem:[#allocation3 + $0x79] sm:$0x1] %vm492_vm2, %v6789_v0  ;;  %521 = vst.msk [vmem:[#allocation3 + $0x89] sm:$0x1] %vm492_vm2, %v6789_v0  ;;  %4517 = vmatpush3.bf16.msra.mxu0 %v5097_v20  ;;  %vm3780_vm7 = vcmask 392192  }
  0x47   :  { %524 = vst.msk [vmem:[#allocation3 + $0xb9] sm:$0x1] %vm492_vm2, %v6789_v0  ;;  %525 = vst.msk [vmem:[#allocation3 + $0xc9] sm:$0x1] %vm492_vm2, %v6789_v0  ;;  %4534 = vmatprep.subr.bf16.mxu0 %v5098_v29 }
  0x48   :  { %526 = vst.msk [vmem:[#allocation3 + $0xd9] sm:$0x1] %vm492_vm2, %v6789_v0  ;;  %527 = vst.msk [vmem:[#allocation3 + $0xe9] sm:$0x1] %vm492_vm2, %v6789_v0  ;;  %4467 = vmatmul.mubr.msk.bf16.gmra.mrb[4].mxu0 %vm117_vm0, %v96_v30 }
  0x49   :  { %528 = vst.msk [vmem:[#allocation3 + $0xf9] sm:$0x1] %vm492_vm2, %v6789_v0  ;;  %529 = vst.msk [vmem:[#allocation3 + $0x109] sm:$0x1] %vm492_vm2, %v6789_v0  ;;  %4475 = vmatmul.mubr.msk.bf16.gmra.mrb[4].mxu1 %vm117_vm0, %v100_v31 }
  0x4a   :  { %530 = vst.msk [vmem:[#allocation3 + $0x119] sm:$0x1] %vm492_vm2, %v6789_v0  ;;  %531 = vst.msk [vmem:[#allocation3 + $0x129] sm:$0x1] %vm492_vm2, %v6789_v0 }
  0x4b   :  { %493 = vst.msk [vmem:[#allocation3] sm:$0x1] %vm492_vm2, %v6789_v0  ;;  %502 = vst.msk [vmem:[#allocation3 + $0x90] sm:$0x1] %vm492_vm2, %v6789_v0 }
  0x4c   :  { %503 = vst.msk [vmem:[#allocation3 + $0xa0] sm:$0x1] %vm492_vm2, %v6789_v0  ;;  %512 = vst.msk [vmem:[#allocation3 + $0x130] sm:$0x1] %vm492_vm2, %v6789_v0 }
  0x4d   :  { %513 = vst.msk [vmem:[#allocation3 + $0x9] sm:$0x1] %vm492_vm2, %v6789_v0  ;;  %522 = vst.msk [vmem:[#allocation3 + $0x99] sm:$0x1] %vm492_vm2, %v6789_v0 }
  0x4e   :  { %523 = vst.msk [vmem:[#allocation3 + $0xa9] sm:$0x1] %vm492_vm2, %v6789_v0  ;;  %532 = vst.msk [vmem:[#allocation3 + $0x139] sm:$0x1] %vm492_vm2, %v6789_v0 }
  0x4f   :  { %551 = vst.msk [vmem:[#allocation3 + $0x11] sm:$0xff] %vm117_vm0, %v77_v3  ;;  %552 = vst.msk [vmem:[#allocation3 + $0x21] sm:$0xff] %vm117_vm0, %v78_v4 }
  0x50   :  { %553 = vst.msk [vmem:[#allocation3 + $0x31] sm:$0xff] %vm117_vm0, %v79_v5  ;;  %554 = vst.msk [vmem:[#allocation3 + $0x41] sm:$0xff] %vm117_vm0, %v80_v7 }
  0x51   :  { %555 = vst.msk [vmem:[#allocation3 + $0x51] sm:$0xff] %vm117_vm0, %v81_v8  ;;  %556 = vst.msk [vmem:[#allocation3 + $0x61] sm:$0xff] %vm117_vm0, %v82_v9 }
  0x52   :  { %557 = vst.msk [vmem:[#allocation3 + $0x71] sm:$0xff] %vm117_vm0, %v83_v10  ;;  %558 = vst.msk [vmem:[#allocation3 + $0x81] sm:$0xff] %vm117_vm0, %v84_v11  ;;  %v593_v59 = vld [vmem:[#allocation3] sm:$0xff] }
  0x53   :  { %559 = vst.msk [vmem:[#allocation3 + $0xb1] sm:$0xff] %vm117_vm0, %v85_v13  ;;  %560 = vst.msk [vmem:[#allocation3 + $0xc1] sm:$0xff] %vm117_vm0, %v86_v15  ;;  %v601_v20 = vld [vmem:[#allocation3 + $0xa0] sm:$0xff] }
  0x54   :  { %561 = vst.msk [vmem:[#allocation3 + $0xd1] sm:$0xff] %vm117_vm0, %v87_v18  ;;  %562 = vst.msk [vmem:[#allocation3 + $0xe1] sm:$0xff] %vm117_vm0, %v88_v19  ;;  %v1367_v30 = vld [vmem:[#allocation3 + $0x2] sm:$0xff] }
  0x55   :  { %563 = vst.msk [vmem:[#allocation3 + $0xf1] sm:$0xff] %vm117_vm0, %v89_v22  ;;  %564 = vst.msk [vmem:[#allocation3 + $0x101] sm:$0xff] %vm117_vm0, %v90_v23  ;;  %v5102_v22 = vld [vmem:[#allocation8 + $0x30] sm:$0xff]   ;;  %v1375_v55 = vld [vmem:[#allocation3 + $0xa2] sm:$0xff] }
  0x56   :  { %565 = vst.msk [vmem:[#allocation3 + $0x111] sm:$0xff] %vm117_vm0, %v91_v25  ;;  %566 = vst.msk [vmem:[#allocation3 + $0x121] sm:$0xff] %vm117_vm0, %v92_v26  ;;  %v5429_v28 = vld [vmem:[#allocation3 + $0x11] sm:$0xff]  ;;  %v5434_v33 = vld [vmem:[#allocation3 + $0x21] sm:$0xff] }
  0x57   :  { %v918_v32 = vpack.c.bf16 %v5429_v28, %v902_v27  ;;  %v5438_v34 = vld [vmem:[#allocation3 + $0x31] sm:$0xff]  ;;  %v5440_v35 = vld [vmem:[#allocation3 + $0x41] sm:$0xff]  ;;  %431 = vst.msk [vmem:[#allocation2] sm:$0xff] %vm239_vm3, %v6789_v0  ;;  %434 = vst.msk [vmem:[#allocation2 + $0xa0] sm:$0xff] %vm239_vm3, %v6789_v0 }
  0x58   :  { %v5444_v37 = vld [vmem:[#allocation3 + $0x51] sm:$0xff]  ;;  %v5450_v39 = vpack.c.bf16 %v5438_v34, %v5434_v33  ;;  %v5456_v42 = vld [vmem:[#allocation3 + $0x61] sm:$0xff]  ;;  %437 = vst.msk [vmem:[#allocation2 + $0x90] sm:$0xff] %vm239_vm3, %v6789_v0  ;;  %439 = vst.msk [vmem:[#allocation2 + $0x130] sm:$0xff] %vm239_vm3, %v6789_v0 }
  0x59   :  { %4518 = vmatprep.mubr.msk.bf16.mxu0 %vm117_vm0, %v918_v32  ;;  %v5454_v40 = vpack.c.bf16 %v5444_v37, %v5440_v35  ;;  %v5464_v44 = vld [vmem:[#allocation3 + $0x71] sm:$0xff]  ;;  %v5515_v3 = vld [vmem:[#allocation3 + $0x22] sm:$0xff] }
  0x5a   :  { %4519 = vmatmul.mubr.msk.bf16.vlgmr.msra.gmra.mrb[8].mxu0 %vm117_vm0, %v5450_v39  ;;  %v5466_v46 = vld [vmem:[#allocation3 + $0xb1] sm:$0xff]  ;;  %v5470_v48 = vpack.c.bf16 %v5464_v44, %v5456_v42  ;;  %v5473_v50 = vld [vmem:[#allocation3 + $0xc1] sm:$0xff] }
  0x5b   :  { %4522 = vmatprep.mubr.msk.bf16.mxu0 %vm117_vm0, %v5454_v40  ;;  %4535 = vmatpush3.bf16.msra.mxu0 %v5098_v29  ;;  %v922_v49 = vpack.c.bf16 %v5466_v46, %v910_v45  ;;  %v5475_v51 = vld [vmem:[#allocation3 + $0xd1] sm:$0xff]  ;;  %v5477_v52 = vld [vmem:[#allocation3 + $0xe1] sm:$0xff] }
  0x5c   :  { %4536 = vmatprep.subr.bf16.mxu0 %v5099_v41  ;;  %v5481_v53 = vld [vmem:[#allocation3 + $0xf1] sm:$0xff]  ;;  %v5490_v56 = vpack.c.bf16 %v5475_v51, %v5473_v50  ;;  %v5496_v58 = vld [vmem:[#allocation3 + $0x101] sm:$0xff] }
  0x5d   :  { %v5494_v57 = vpack.c.bf16 %v5481_v53, %v5477_v52  ;;  %v5500_v60 = vld [vmem:[#allocation3 + $0x10] sm:$0xff]  ;;  %v5521_v5 = vld [vmem:[#allocation3 + $0x42] sm:$0xff] }
  0x5e   :  { %v5506_v62 = vld [vmem:[#allocation3 + $0x111] sm:$0xff]  ;;  %v609_v1 = vpack.c.bf16 %v5500_v60, %v593_v59  ;;  %v5526_v7 = vld [vmem:[#allocation3 + $0x20] sm:$0xff] }
  0x5f   :  { %4537 = vmatpush3.bf16.msra.mxu0 %v5099_v41  ;;  %v5510_v63 = vpack.c.bf16 %v5506_v62, %v5496_v58  ;;  %v5513_v2 = vld [vmem:[#allocation3 + $0x12] sm:$0xff]  ;;  %v5532_v10 = vld [vmem:[#allocation3 + $0x40] sm:$0xff] }
  0x60   :  { %4572 = vmatprep.subr.bf16.mxu0 %v5100_v47  ;;  %v5519_v4 = vld [vmem:[#allocation3 + $0x32] sm:$0xff]  ;;  %v5546_v16 = vld [vmem:[#allocation3 + $0x62] sm:$0xff]  ;;  %v1383_v9 = vpack.c.bf16 %v5513_v2, %v1367_v30 }
  0x61   :  { %v5528_v8 = vld [vmem:[#allocation3 + $0x30] sm:$0xff]  ;;  %v5554_v18 = vld [vmem:[#allocation3 + $0x60] sm:$0xff]  ;;  %v5614_v6 = vpack.c.bf16 %v5519_v4, %v5515_v3 }
  0x62   :  { %4523 = vmatmul.mubr.msk.bf16.gmra.mrb[12].mxu0 %vm117_vm0, %v5470_v48  ;;  %v5534_v11 = vld [vmem:[#allocation3 + $0x50] sm:$0xff]  ;;  %v5538_v12 = vpack.c.bf16 %v5528_v8, %v5526_v7  ;;  %v5567_v26 = vld [vmem:[#allocation3 + $0xc2] sm:$0xff]  ;;  %v1732_v0 = vpack.c.bf16 %v5532_v10, %v5528_v8 }
  0x63   :  { %4526 = vmatprep.mubr.msk.bf16.mxu0 %vm117_vm0, %v922_v49  ;;  %v5542_v13 = vpack.c.bf16 %v5534_v11, %v5532_v10  ;;  %v5544_v15 = vld [vmem:[#allocation3 + $0x52] sm:$0xff]  ;;  %v5573_v29 = vld [vmem:[#allocation3 + $0xe2] sm:$0xff]  ;;  %v1733_v36 = vpack.c.bf16 %v5554_v18, %v5534_v11 }
  0x64   :  { %v5556_v19 = vld [vmem:[#allocation3 + $0x70] sm:$0xff]  ;;  %v5578_v31 = vld [vmem:[#allocation3 + $0xc0] sm:$0xff] }
  0x65   :  { %v5558_v21 = vld [vmem:[#allocation3 + $0xb0] sm:$0xff]  ;;  %v5562_v23 = vpack.c.bf16 %v5556_v19, %v5554_v18  ;;  %v5584_v45 = vld [vmem:[#allocation3 + $0xe0] sm:$0xff]  ;;  %v6800_v18 = vpack.c.bf16 %v5440_v35, %v5438_v34  ;;  %v5114_v34 = vld [vmem:[#allocation6 + $0x8] sm:$0xff]   ;;  %v6803_v35 = vmov 0.0  }
  0x66   :  { %v613_v24 = vpack.c.bf16 %v5558_v21, %v601_v20  ;;  %v5565_v25 = vld [vmem:[#allocation3 + $0xb2] sm:$0xff]  ;;  %v5618_v20 = vpack.c.bf16 %v5544_v15, %v5521_v5  ;;  %v5684_v8 = vld [vmem:[#allocation3 + $0x120] sm:$0xff]  ;;  %433 = vst.msk [vmem:[#allocation2 + $0x8] sm:$0x3] %vm432_vm4, %v6803_v35  ;;  %435 = vst.msk [vmem:[#allocation2 + $0xa8] sm:$0x3] %vm432_vm4, %v6803_v35  ;;  %4478 = vmatprep.subr.bf16.mxu1 %v5114_v34 }
  0x67   :  { %v5571_v27 = vld [vmem:[#allocation3 + $0xd2] sm:$0xff]  ;;  %v5107_v11 = vld [vmem:[#allocation8 + $0x58] sm:$0xff]   ;;  %438 = vst.msk [vmem:[#allocation2 + $0x98] sm:$0x3] %vm432_vm4, %v6803_v35  ;;  %440 = vst.msk [vmem:[#allocation2 + $0x138] sm:$0x3] %vm432_vm4, %v6803_v35  ;;  %4479 = vmatpush3.bf16.msra.mxu1 %v5114_v34 }
  0x68   :  { %v5580_v32 = vld [vmem:[#allocation3 + $0xd0] sm:$0xff]  ;;  %v5644_v43 = vpack.c.bf16 %v5571_v27, %v5567_v26  ;;  %442 = vst.msk [vmem:[#allocation2] sm:$0x1] %vm441_vm5, %v6803_v35  ;;  %443 = vst.msk [vmem:[#allocation2 + $0x10] sm:$0x1] %vm441_vm5, %v6803_v35 }
  0x69   :  { %v5590_v49 = vpack.c.bf16 %v5580_v32, %v5578_v31  ;;  %v608_v41 = vld [vmem:[#allocation3 + $0x110] sm:$0xff]  ;;  %444 = vst.msk [vmem:[#allocation2 + $0x20] sm:$0x1] %vm441_vm5, %v6803_v35  ;;  %445 = vst.msk [vmem:[#allocation2 + $0x30] sm:$0x1] %vm441_vm5, %v6803_v35 }
  0x6a   :  { %4527 = vmatmul.mubr.msk.bf16.gmra.mrb[16].mxu0 %vm117_vm0, %v5490_v56  ;;  %v5624_v30 = vld [vmem:[#allocation3 + $0x72] sm:$0xff]  ;;  %6797 = vst [vmem:[#allocation11_spill] sm:$0xff] %v5644_v43  ;;  %v1738_v10 = vpack.c.bf16 %v5684_v8, %v608_v41  ;;  %446 = vst.msk [vmem:[#allocation2 + $0x40] sm:$0x1] %vm441_vm5, %v6803_v35 }
  0x6b   :  { %4530 = vmatprep.mubr.msk.bf16.mxu0 %vm117_vm0, %v5494_v57  ;;  %v5628_v54 = vpack.c.bf16 %v5624_v30, %v5546_v16  ;;  %447 = vst.msk [vmem:[#allocation2 + $0x50] sm:$0x1] %vm441_vm5, %v6803_v35  ;;  %448 = vst.msk [vmem:[#allocation2 + $0x60] sm:$0x1] %vm441_vm5, %v6803_v35 }
  0x6c   :  { %449 = vst.msk [vmem:[#allocation2 + $0x70] sm:$0x1] %vm441_vm5, %v6803_v35  ;;  %450 = vst.msk [vmem:[#allocation2 + $0x80] sm:$0x1] %vm441_vm5, %v6803_v35 }
  0x6d   :  { %451 = vst.msk [vmem:[#allocation2 + $0x90] sm:$0x1] %vm441_vm5, %v6803_v35  ;;  %452 = vst.msk [vmem:[#allocation2 + $0xa0] sm:$0x1] %vm441_vm5, %v6803_v35 }
  0x6e   :  { %453 = vst.msk [vmem:[#allocation2 + $0xb0] sm:$0x1] %vm441_vm5, %v6803_v35  ;;  %454 = vst.msk [vmem:[#allocation2 + $0xc0] sm:$0x1] %vm441_vm5, %v6803_v35 }
  0x6f   :  { %455 = vst.msk [vmem:[#allocation2 + $0xd0] sm:$0x1] %vm441_vm5, %v6803_v35  ;;  %456 = vst.msk [vmem:[#allocation2 + $0xe0] sm:$0x1] %vm441_vm5, %v6803_v35 }
  0x70   :  { %457 = vst.msk [vmem:[#allocation2 + $0xf0] sm:$0x1] %vm441_vm5, %v6803_v35  ;;  %458 = vst.msk [vmem:[#allocation2 + $0x100] sm:$0x1] %vm441_vm5, %v6803_v35 }
  0x71   :  { %459 = vst.msk [vmem:[#allocation2 + $0x110] sm:$0x1] %vm441_vm5, %v6803_v35  ;;  %460 = vst.msk [vmem:[#allocation2 + $0x120] sm:$0x1] %vm441_vm5, %v6803_v35 }
  0x72   :  { %4531 = vmatmul.mubr.msk.bf16.gmra.mrb[20].mxu0 %vm117_vm0, %v5510_v63  ;;  %461 = vst.msk [vmem:[#allocation2 + $0x130] sm:$0x1] %vm441_vm5, %v6803_v35  ;;  %462 = vst.msk [vmem:[#allocation2 + $0x9] sm:$0x1] %vm441_vm5, %v6803_v35 }
  0x73   :  { %4538 = vmatprep.mubr.msk.bf16.mxu0 %vm117_vm0, %v609_v1  ;;  %v5596_v1 = vld [vmem:[#allocation3 + $0xf2] sm:$0xff]  ;;  %463 = vst.msk [vmem:[#allocation2 + $0x19] sm:$0x1] %vm441_vm5, %v6803_v35  ;;  %464 = vst.msk [vmem:[#allocation2 + $0x29] sm:$0x1] %vm441_vm5, %v6803_v35 }
  0x74   :  { %v5648_v38 = vpack.c.bf16 %v5596_v1, %v5573_v29  ;;  %465 = vst.msk [vmem:[#allocation2 + $0x39] sm:$0x1] %vm441_vm5, %v6803_v35  ;;  %466 = vst.msk [vmem:[#allocation2 + $0x49] sm:$0x1] %vm441_vm5, %v6803_v35 }
  0x75   :  { %467 = vst.msk [vmem:[#allocation2 + $0x59] sm:$0x1] %vm441_vm5, %v6803_v35  ;;  %468 = vst.msk [vmem:[#allocation2 + $0x69] sm:$0x1] %vm441_vm5, %v6803_v35 }
  0x76   :  { %6798 = vst [vmem:[#allocation12_spill] sm:$0xff] %v5648_v38  ;;  %469 = vst.msk [vmem:[#allocation2 + $0x79] sm:$0x1] %vm441_vm5, %v6803_v35 }
  0x77   :  { %470 = vst.msk [vmem:[#allocation2 + $0x89] sm:$0x1] %vm441_vm5, %v6803_v35  ;;  %471 = vst.msk [vmem:[#allocation2 + $0x99] sm:$0x1] %vm441_vm5, %v6803_v35 }
  0x78   :  { %472 = vst.msk [vmem:[#allocation2 + $0xa9] sm:$0x1] %vm441_vm5, %v6803_v35  ;;  %473 = vst.msk [vmem:[#allocation2 + $0xb9] sm:$0x1] %vm441_vm5, %v6803_v35 }
  0x79   :  { %474 = vst.msk [vmem:[#allocation2 + $0xc9] sm:$0x1] %vm441_vm5, %v6803_v35  ;;  %475 = vst.msk [vmem:[#allocation2 + $0xd9] sm:$0x1] %vm441_vm5, %v6803_v35 }
  0x7a   :  { %4539 = vmatmul.mubr.msk.bf16.vlgmr.msra.gmra.mrb[8].mxu0 %vm117_vm0, %v5538_v12  ;;  %476 = vst.msk [vmem:[#allocation2 + $0xe9] sm:$0x1] %vm441_vm5, %v6803_v35  ;;  %477 = vst.msk [vmem:[#allocation2 + $0xf9] sm:$0x1] %vm441_vm5, %v6803_v35 }
  0x7b   :  { %4542 = vmatprep.mubr.msk.bf16.mxu0 %vm117_vm0, %v5542_v13  ;;  %4573 = vmatpush3.bf16.msra.mxu0 %v5100_v47  ;;  %v5586_v47 = vld [vmem:[#allocation3 + $0xf0] sm:$0xff]  ;;  %478 = vst.msk [vmem:[#allocation2 + $0x109] sm:$0x1] %vm441_vm5, %v6803_v35  ;;  %479 = vst.msk [vmem:[#allocation2 + $0x119] sm:$0x1] %vm441_vm5, %v6803_v35 }
  0x7c   :  { %4574 = vmatprep.subr.bf16.mxu0 %v5101_v14  ;;  %v5594_v59 = vpack.c.bf16 %v5586_v47, %v5584_v45  ;;  %480 = vst.msk [vmem:[#allocation2 + $0x129] sm:$0x1] %vm441_vm5, %v6803_v35  ;;  %481 = vst.msk [vmem:[#allocation2 + $0x139] sm:$0x1] %vm441_vm5, %v6803_v35 }
  0x7f   :  { %4575 = vmatpush3.bf16.msra.mxu0 %v5101_v14  ;;  %v5598_v14 = vld [vmem:[#allocation3 + $0x102] sm:$0xff] }
  0x80   :  { %4610 = vmatprep.subr.bf16.mxu0 %v5102_v22 }
  0x82   :  { %4543 = vmatmul.mubr.msk.bf16.gmra.mrb[12].mxu0 %vm117_vm0, %v5562_v23 }
  0x83   :  { %4546 = vmatprep.mubr.msk.bf16.mxu0 %vm117_vm0, %v613_v24  ;;  %v607_v24 = vld [vmem:[#allocation3 + $0x100] sm:$0xff] }
  0x84   :  { %v5606_v17 = vpack.c.bf16 %v608_v41, %v607_v24 }
  0x8a   :  { %4547 = vmatmul.mubr.msk.bf16.gmra.mrb[16].mxu0 %vm117_vm0, %v5590_v49 }
  0x8b   :  { %4550 = vmatprep.mubr.msk.bf16.mxu0 %vm117_vm0, %v5594_v59 }
  0x92   :  { %4551 = vmatmul.mubr.msk.bf16.gmra.mrb[20].mxu0 %vm117_vm0, %v5606_v17 }
  0x93   :  { %4576 = vmatprep.mubr.msk.bf16.mxu0 %vm117_vm0, %v1383_v9  ;;  %v5104_v9 = vld [vmem:[#allocation8 + $0x40] sm:$0xff]  }
  0x9a   :  { %4577 = vmatmul.mubr.msk.bf16.vlgmr.msra.gmra.mrb[8].mxu0 %vm117_vm0, %v5614_v6 }
  0x9b   :  { %4580 = vmatprep.mubr.msk.bf16.mxu0 %vm117_vm0, %v5618_v20  ;;  %4611 = vmatpush3.bf16.msra.mxu0 %v5102_v22  ;;  %v1387_v22 = vpack.c.bf16 %v5565_v25, %v1375_v55  ;;  %v5654_v55 = vld [vmem:[#allocation3 + $0x112] sm:$0xff] }
  0x9c   :  { %4612 = vmatprep.subr.bf16.mxu0 %v5103_v61 }
  0x9f   :  { %4613 = vmatpush3.bf16.msra.mxu0 %v5103_v61  ;;  %v5658_v61 = vpack.c.bf16 %v5654_v55, %v5598_v14 }
  0xa0   :  { %4648 = vmatprep.subr.bf16.mxu0 %v5104_v9 }
  0xa2   :  { %4581 = vmatmul.mubr.msk.bf16.gmra.mrb[12].mxu0 %vm117_vm0, %v5628_v54 }
  0xa3   :  { %4584 = vmatprep.mubr.msk.bf16.mxu0 %vm117_vm0, %v1387_v22  ;;  %v1731_v22 = vpack.c.bf16 %v5526_v7, %v5500_v60  ;;  %v5106_v60 = vld [vmem:[#allocation8 + $0x50] sm:$0xff]  }
  0xaa   :  { %4585 = vmatmul.mubr.msk.bf16.gmra.mrb[16].mxu0 %vm117_vm0, %v5644_v43  ;;  %v5671_v43 = vld [vmem:[#allocation3 + $0x80] sm:$0xff] }
  0xab   :  { %4588 = vmatprep.mubr.msk.bf16.mxu0 %vm117_vm0, %v5648_v38  ;;  %v5105_v38 = vld [vmem:[#allocation8 + $0x48] sm:$0xff]   ;;  %v1734_v7 = vpack.c.bf16 %v5671_v43, %v5556_v19  ;;  %v6801_v19 = vpack.c.bf16 %v5456_v42, %v5444_v37  ;;  %v6804_v37 = vpack.c.bf16 %v5477_v52, %v5475_v51  ;;  %v6805_v42 = vpack.c.bf16 %v5496_v58, %v5481_v53 }
  0xac   :  { %v6806_v51 = vpack.c.bf16 %v5515_v3, %v5513_v2  ;;  %v5109_v52 = vld [vmem:[#allocation8 + $0x68] sm:$0xff]   ;;  %v6807_v53 = vpack.c.bf16 %v5521_v5, %v5519_v4  ;;  %v6808_v58 = vpack.c.bf16 %v5546_v16, %v5544_v15  ;;  %v5110_v2 = vld [vmem:[#allocation8 + $0x70] sm:$0xff]   ;;  %v6809_v4 = vpack.c.bf16 %v5567_v26, %v5565_v25  ;;  %v5842_v16 = vld [vmem:[#allocation3 + $0x122] sm:$0xff] }
  0xad   :  { %v6810_v5 = vpack.c.bf16 %v5573_v29, %v5571_v27  ;;  %v6811_v15 = vpack.c.bf16 %v5598_v14, %v5596_v1  ;;  %v5111_v25 = vld [vmem:[#allocation8 + $0x78] sm:$0xff]   ;;  %v2768_v26 = vld [vmem:[#allocation3 + $0x90] sm:$0xff]  ;;  %v5853_v27 = vld [vmem:[#allocation8 + $0x80] sm:$0xff]  }
  0xb2   :  { %4589 = vmatmul.mubr.msk.bf16.gmra.mrb[20].mxu0 %vm117_vm0, %v5658_v61 }
  0xb3   :  { %4614 = vmatprep.mubr.msk.bf16.mxu0 %vm117_vm0, %v1731_v22  ;;  %v1735_v22 = vpack.c.bf16 %v5578_v31, %v5558_v21  ;;  %v5700_v21 = vld [vmem:[#allocation3 + $0x81] sm:$0xff] }
  0xb4   :  { %v5702_v31 = vld [vmem:[#allocation8 + $0x60] sm:$0xff]  }
  0xba   :  { %4615 = vmatmul.mubr.msk.bf16.vlgmr.msra.gmra.mrb[8].mxu0 %vm117_vm0, %v1732_v0  ;;  %v1736_v0 = vpack.c.bf16 %v5584_v45, %v5580_v32  ;;  %v2434_v32 = vpack.c.bf16 %v5842_v16, %v5654_v55 }
  0xbb   :  { %4618 = vmatprep.mubr.msk.bf16.mxu0 %vm117_vm0, %v1733_v36  ;;  %4649 = vmatpush3.bf16.msra.mxu0 %v5104_v9  ;;  %v1737_v36 = vpack.c.bf16 %v607_v24, %v5586_v47 }
  0xbc   :  { %4650 = vmatprep.subr.bf16.mxu0 %v5105_v38 }
  0xbf   :  { %4651 = vmatpush3.bf16.msra.mxu0 %v5105_v38  ;;  %v6799_v38 = vpack.c.bf16 %v5434_v33, %v5429_v28  ;;  %v2082_v28 = vpack.c.bf16 %v5700_v21, %v5464_v44  ;;  %v6802_v33 = vpack.c.bf16 %v5473_v50, %v5466_v46  ;;  %v5724_v44 = vld [vmem:[#allocation3 + $0x121] sm:$0xff] }
  0xc0   :  { %4686 = vmatprep.subr.bf16.mxu0 %v5106_v60  ;;  %v2086_v46 = vpack.c.bf16 %v5724_v44, %v5506_v62  ;;  %v5808_v50 = vld [vmem:[#allocation6] sm:$0xff]  }
  0xc1   :  { %4496 = vmatprep.subr.bf16.mxu1 %v5808_v50  ;;  %v5824_v62 = vld [vmem:[#allocation3 + $0x82] sm:$0xff] }
  0xc2   :  { %4619 = vmatmul.mubr.msk.bf16.gmra.mrb[12].mxu0 %vm117_vm0, %v1734_v7  ;;  %v2430_v3 = vpack.c.bf16 %v5824_v62, %v5624_v30 }
  0xc3   :  { %4622 = vmatprep.mubr.msk.bf16.mxu0 %vm117_vm0, %v1735_v22 }
  0xca   :  { %4623 = vmatmul.mubr.msk.bf16.gmra.mrb[16].mxu0 %vm117_vm0, %v1736_v0 }
  0xcb   :  { %4626 = vmatprep.mubr.msk.bf16.mxu0 %vm117_vm0, %v1737_v36 }
  0xd2   :  { %4627 = vmatmul.mubr.msk.bf16.gmra.mrb[20].mxu0 %vm117_vm0, %v1738_v10 }
  0xd3   :  { %4652 = vmatprep.mubr.msk.bf16.mxu0 %vm117_vm0, %v6799_v38 }
  0xda   :  { %4653 = vmatmul.mubr.msk.bf16.vlgmr.msra.gmra.mrb[8].mxu0 %vm117_vm0, %v6800_v18 }
  0xdb   :  { %4656 = vmatprep.mubr.msk.bf16.mxu0 %vm117_vm0, %v6801_v19  ;;  %4687 = vmatpush3.bf16.msra.mxu0 %v5106_v60 }
  0xdc   :  { %4688 = vmatprep.subr.bf16.mxu0 %v5107_v11 }
  0xdf   :  { %4689 = vmatpush3.bf16.msra.mxu0 %v5107_v11 }
  0xe0   :  { %4724 = vmatprep.subr.bf16.mxu0 %v5702_v31 }
  0xe2   :  { %4657 = vmatmul.mubr.msk.bf16.gmra.mrb[12].mxu0 %vm117_vm0, %v2082_v28 }
  0xe3   :  { %4660 = vmatprep.mubr.msk.bf16.mxu0 %vm117_vm0, %v6802_v33 }
  0xea   :  { %4661 = vmatmul.mubr.msk.bf16.gmra.mrb[16].mxu0 %vm117_vm0, %v6804_v37 }
  0xeb   :  { %4664 = vmatprep.mubr.msk.bf16.mxu0 %vm117_vm0, %v6805_v42 }
  0xf2   :  { %4665 = vmatmul.mubr.msk.bf16.gmra.mrb[20].mxu0 %vm117_vm0, %v2086_v46 }
  0xf3   :  { %4690 = vmatprep.mubr.msk.bf16.mxu0 %vm117_vm0, %v6806_v51 }
  0xfa   :  { %4691 = vmatmul.mubr.msk.bf16.vlgmr.msra.gmra.mrb[8].mxu0 %vm117_vm0, %v6807_v53 }
  0xfb   :  { %4694 = vmatprep.mubr.msk.bf16.mxu0 %vm117_vm0, %v6808_v58  ;;  %4725 = vmatpush3.bf16.msra.mxu0 %v5702_v31 }
  0xfc   :  { %4726 = vmatprep.subr.bf16.mxu0 %v5109_v52 }
  0xff   :  { %4727 = vmatpush3.bf16.msra.mxu0 %v5109_v52 }
 0x100   :  { %4762 = vmatprep.subr.bf16.mxu0 %v5110_v2 }
 0x102   :  { %4695 = vmatmul.mubr.msk.bf16.gmra.mrb[12].mxu0 %vm117_vm0, %v2430_v3 }
 0x103   :  { %4698 = vmatprep.mubr.msk.bf16.mxu0 %vm117_vm0, %v6809_v4 }
 0x10a   :  { %4699 = vmatmul.mubr.msk.bf16.gmra.mrb[16].mxu0 %vm117_vm0, %v6810_v5 }
 0x10b   :  { %4702 = vmatprep.mubr.msk.bf16.mxu0 %vm117_vm0, %v6811_v15 }
 0x112   :  { %4703 = vmatmul.mubr.msk.bf16.gmra.mrb[20].mxu0 %vm117_vm0, %v2434_v32 }
 0x113   :  { %4728 = vmatprep.mubr.msk.bf16.mxu0 %vm117_vm0, %v5538_v12  ;;  %v5855_v29 = vpop.f32.mrb[0].mxu0  ;;  %v2780_v12 = vpack.c.bf16 %v2768_v26, %v5671_v43 }
 0x114   :  { %v5857_v41 = vpop.f32.mrb[0].mxu1  ;;  %v5859_v45 = vpop.f32.mrb[1].mxu0  ;;  %v281_v30 = vmul.f32 %v5855_v29, %v5855_v29  ;;  %v243_v7 = vsel %vm239_vm3, %v5855_v29, 0.0 }
 0x115   :  { %v5862_v47 = vpop.f32.mrb[1].mxu1  ;;  %v5866_v1 = vpop.f32.mrb[2].mxu0  ;;  %v240_v43 = vsel %vm239_vm3, %v5859_v45, 0.0 }
 0x116   :  { %v5870_v14 = vpop.f32.mrb[3].mxu0  ;;  %v282_v0 = vmul.f32 %v5866_v1, %v5866_v1  ;;  %v298_v11 = vsel %vm239_vm3, %v281_v30, 0.0  ;;  %v245_v18 = vsel %vm239_vm3, %v5866_v1, 0.0  ;;  %v287_v30 = vmul.f32 %v5862_v47, %v5862_v47 }
 0x117   :  { %v241_v9 = vsel %vm239_vm3, %v5870_v14, 0.0  ;;  %v280_v55 = vmul.f32 %v5870_v14, %v5870_v14 }
 0x118   :  { %v242_v60 = vadd.f32 %v241_v9, %v240_v43  ;;  %v300_v37 = vsel %vm239_vm3, %v282_v0, 0.0  ;;  %v2776_v43 = vld [vmem:[#allocation3 + $0x130] sm:$0xff] }
 0x119   :  { %v296_v36 = vsel %vm239_vm3, %v280_v55, 0.0 }
 0x11a   :  { %4729 = vmatmul.mubr.msk.bf16.vlgmr.msra.gmra.mrb[8].mxu0 %vm117_vm0, %v5542_v13  ;;  %v279_v13 = vmul.f32 %v5859_v45, %v5859_v45  ;;  %v244_v10 = vadd.f32 %v243_v7, %v242_v60  ;;  %v255_v7 = vsel %vm239_vm3, %v5862_v47, 0.0 }
 0x11b   :  { %4732 = vmatprep.mubr.msk.bf16.mxu0 %vm117_vm0, %v5562_v23  ;;  %4763 = vmatpush3.bf16.msra.mxu0 %v5110_v2  ;;  %v5868_v23 = vpop.f32.mrb[2].mxu1  ;;  %v5895_v19 = vpop.f32.mrb[4].mxu0 }
 0x11c   :  { %4764 = vmatprep.subr.bf16.mxu0 %v5111_v25  ;;  %v5872_v24 = vpop.f32.mrb[3].mxu1  ;;  %v295_v22 = vsel %vm239_vm3, %v279_v13, 0.0  ;;  %v5899_v33 = vpop.f32.mrb[5].mxu0  ;;  %v246_v34 = vadd.f32 %v245_v18, %v244_v10  ;;  %v285_v3 = vmul.f32 %v5895_v19, %v5895_v19  ;;  %v251_v26 = vsel %vm239_vm3, %v5895_v19, 0.0 }
 0x11d   :  { %v297_v38 = vadd.f32 %v296_v36, %v295_v22  ;;  %v5897_v31 = vpop.f32.mrb[4].mxu1  ;;  %v283_v42 = vmul.f32 %v5899_v33, %v5899_v33  ;;  %v5908_v46 = vpop.f32.mrb[6].mxu0  ;;  %v2784_v36 = vpack.c.bf16 %v2776_v43, %v5684_v8  ;;  %v259_v8 = vsel %vm239_vm3, %v5857_v41, 0.0 }
 0x11e   :  { %v5901_v35 = vpop.f32.mrb[5].mxu1  ;;  %v5912_v58 = vpop.f32.mrb[7].mxu0  ;;  %v306_v60 = vsel %vm239_vm3, %v285_v3, 0.0 }
 0x11f   :  { %4765 = vmatpush3.bf16.msra.mxu0 %v5111_v25  ;;  %v299_v28 = vadd.f32 %v298_v11, %v297_v38  ;;  %v5910_v51 = vpop.f32.mrb[6].mxu1  ;;  %v302_v4 = vsel %vm239_vm3, %v283_v42, 0.0  ;;  %v249_v5 = vsel %vm239_vm3, %v5912_v58, 0.0  ;;  %v284_v15 = vmul.f32 %v5912_v58, %v5912_v58 }
 0x120   :  { %4800 = vmatprep.subr.bf16.mxu0 %v5853_v27  ;;  %v5914_v2 = vpop.f32.mrb[7].mxu1  ;;  %v310_v38 = vsel %vm239_vm3, %v287_v30, 0.0  ;;  %v290_v42 = vmul.f32 %v5868_v23, %v5868_v23 }
 0x121   :  { %v301_v53 = vadd.f32 %v300_v37, %v299_v28  ;;  %v304_v13 = vsel %vm239_vm3, %v284_v15, 0.0  ;;  %v289_v28 = vmul.f32 %v5857_v41, %v5857_v41  ;;  %v261_v15 = vsel %vm239_vm3, %v5868_v23, 0.0 }
 0x122   :  { %4733 = vmatmul.mubr.msk.bf16.gmra.mrb[12].mxu0 %vm117_vm0, %v2780_v12  ;;  %v286_v12 = vmul.f32 %v5908_v46, %v5908_v46  ;;  %v292_v30 = vmul.f32 %v5914_v2, %v5914_v2 }
 0x123   :  { %4736 = vmatprep.mubr.msk.bf16.mxu0 %vm117_vm0, %v5590_v49  ;;  %v247_v49 = vsel %vm239_vm3, %v5899_v33, 0.0  ;;  %v303_v32 = vadd.f32 %v302_v4, %v301_v53  ;;  %v291_v53 = vmul.f32 %v5901_v35, %v5901_v35 }
 0x124   :  { %v248_v52 = vadd.f32 %v247_v49, %v246_v34  ;;  %v308_v10 = vsel %vm239_vm3, %v286_v12, 0.0  ;;  %v257_v34 = vsel %vm239_vm3, %v5872_v24, 0.0  ;;  %v316_v12 = vsel %vm239_vm3, %v290_v42, 0.0 }
 0x125   :  { %v305_v55 = vadd.f32 %v304_v13, %v303_v32  ;;  %v263_v32 = vsel %vm239_vm3, %v5901_v35, 0.0  ;;  %v318_v13 = vsel %vm239_vm3, %v291_v53, 0.0 }
 0x126   :  { %v250_v25 = vadd.f32 %v249_v5, %v248_v52  ;;  %v314_v5 = vsel %vm239_vm3, %v289_v28, 0.0 }
 0x127   :  { %v307_v22 = vadd.f32 %v306_v60, %v305_v55  ;;  %v293_v55 = vmul.f32 %v5897_v31, %v5897_v31  ;;  %v265_v60 = vsel %vm239_vm3, %v5914_v2, 0.0 }
 0x128   :  { %v252_v9 = vadd.f32 %v251_v26, %v250_v25 }
 0x129   :  { %v309_v18 = vadd.f32 %v308_v10, %v307_v22  ;;  %v267_v22 = vsel %vm239_vm3, %v5897_v31, 0.0  ;;  %v3116_v10 = vld [vmem:[#allocation3 + $0x91] sm:$0xff] }
 0x12a   :  { %4737 = vmatmul.mubr.msk.bf16.gmra.mrb[16].mxu0 %vm117_vm0, %v5594_v59  ;;  %v253_v59 = vsel %vm239_vm3, %v5908_v46, 0.0 }
 0x12b   :  { %4740 = vmatprep.mubr.msk.bf16.mxu0 %vm117_vm0, %v5606_v17  ;;  %v254_v0 = vadd.f32 %v253_v59, %v252_v9  ;;  %v288_v17 = vmul.f32 %v5872_v24, %v5872_v24  ;;  %v311_v37 = vadd.f32 %v310_v38, %v309_v18  ;;  %v5113_v9 = vld [vmem:[#allocation8 + $0x88] sm:$0xff]  }
 0x12d   :  { %v256_v11 = vadd.f32 %v255_v7, %v254_v0  ;;  %v312_v52 = vsel %vm239_vm3, %v288_v17, 0.0  ;;  %v294_v0 = vmul.f32 %v5910_v51, %v5910_v51 }
 0x12e   :  { %v313_v4 = vadd.f32 %v312_v52, %v311_v37 }
 0x12f   :  { %v258_v49 = vadd.f32 %v257_v34, %v256_v11  ;;  %v322_v11 = vsel %vm239_vm3, %v293_v55, 0.0  ;;  %v3128_v34 = vpack.c.bf16 %v3116_v10, %v5700_v21  ;;  %v324_v37 = vsel %vm239_vm3, %v294_v0, 0.0 }
 0x130   :  { %v315_v25 = vadd.f32 %v314_v5, %v313_v4 }
 0x131   :  { %v260_v3 = vadd.f32 %v259_v8, %v258_v49 }
 0x132   :  { %4741 = vmatmul.mubr.msk.bf16.gmra.mrb[20].mxu0 %vm117_vm0, %v2784_v36  ;;  %v317_v43 = vadd.f32 %v316_v12, %v315_v25  ;;  %v320_v36 = vsel %vm239_vm3, %v292_v30, 0.0 }
 0x133   :  { %4766 = vmatprep.mubr.msk.bf16.mxu0 %vm117_vm0, %v5450_v39  ;;  %v262_v26 = vadd.f32 %v261_v15, %v260_v3 }
 0x134   :  { %v319_v59 = vadd.f32 %v318_v13, %v317_v43 }
 0x135   :  { %v264_v39 = vadd.f32 %v263_v32, %v262_v26  ;;  %v3124_v32 = vld [vmem:[#allocation3 + $0x131] sm:$0xff] }
 0x136   :  { %v321_v17 = vadd.f32 %v320_v36, %v319_v59 }
 0x137   :  { %v266_v7 = vadd.f32 %v265_v60, %v264_v39 }
 0x138   :  { %v323_v28 = vadd.f32 %v322_v11, %v321_v17 }
 0x139   :  { %v268_v38 = vadd.f32 %v267_v22, %v266_v7 }
 0x13a   :  { %4767 = vmatmul.mubr.msk.bf16.vlgmr.msra.gmra.mrb[8].mxu0 %vm117_vm0, %v5454_v40  ;;  %v269_v40 = vsel %vm239_vm3, %v5910_v51, 0.0 }
 0x13b   :  { %4770 = vmatprep.mubr.msk.bf16.mxu0 %vm117_vm0, %v5470_v48  ;;  %4801 = vmatpush3.bf16.msra.mxu0 %v5853_v27  ;;  %v270_v18 = vadd.f32 %v269_v40, %v268_v38  ;;  %v325_v48 = vadd.f32 %v324_v37, %v323_v28  ;;  %v6812_v28 = vld [vmem:[#allocation11_spill] sm:$0xff] }
 0x13c   :  { %4802 = vmatprep.subr.bf16.mxu0 %v5113_v9 }
 0x13d   :  { %v271_v49 = vrot.slane %v270_v18, 4  ;;  %v326_v42 = vrot.slane %v325_v48, 4 }
 0x13f   :  { %4803 = vmatpush3.bf16.msra.mxu0 %v5113_v9  ;;  %v272_v8 = vadd.f32 %v271_v49, %v270_v18  ;;  %v327_v52 = vadd.f32 %v326_v42, %v325_v48 }
 0x141   :  { %v273_v27 = vrot.slane %v272_v8, 2  ;;  %v328_v3 = vrot.slane %v327_v52, 2 }
 0x142   :  { %4771 = vmatmul.mubr.msk.bf16.gmra.mrb[12].mxu0 %vm117_vm0, %v3128_v34 }
 0x143   :  { %4774 = vmatprep.mubr.msk.bf16.mxu0 %vm117_vm0, %v5490_v56  ;;  %v274_v53 = vadd.f32 %v273_v27, %v272_v8  ;;  %v329_v5 = vadd.f32 %v328_v3, %v327_v52  ;;  %v3132_v56 = vpack.c.bf16 %v3124_v32, %v5724_v44 }
 0x145   :  { %v275_v4 = vrot.slane %v274_v53, 1  ;;  %v330_v21 = vrot.slane %v329_v5, 1 }
 0x147   :  { %v276_v15 = vadd.f32 %v275_v4, %v274_v53  ;;  %v331_v26 = vadd.f32 %v330_v21, %v329_v5 }
 0x149   :  { %v5993_v25 = vmul.f32 0.0078125, %v276_v15  ;;  %v332_v12 = vmul.f32 0.0078125, %v331_v26 }
 0x14a   :  { %4775 = vmatmul.mubr.msk.bf16.gmra.mrb[16].mxu0 %vm117_vm0, %v5494_v57 }
 0x14b   :  { %4778 = vmatprep.mubr.msk.bf16.mxu0 %vm117_vm0, %v5510_v63  ;;  %v333_v13 = vmul.f32 %v5993_v25, %v5993_v25  ;;  %v348_v30 = vsub.f32 %v5914_v2, %v5993_v25  ;;  %v335_v39 = vsub.f32 %v5859_v45, %v5993_v25  ;;  %v336_v57 = vsub.f32 %v5870_v14, %v5993_v25 }
 0x14c   :  { %v337_v63 = vsub.f32 %v5855_v29, %v5993_v25  ;;  %v338_v43 = vsub.f32 %v5866_v1, %v5993_v25  ;;  %v339_v44 = vsub.f32 %v5899_v33, %v5993_v25  ;;  %v340_v55 = vsub.f32 %v5912_v58, %v5993_v25 }
 0x14d   :  { %v334_v9 = vsub.f32 %v332_v12, %v333_v13  ;;  %v341_v2 = vsub.f32 %v5895_v19, %v5993_v25  ;;  %v343_v45 = vsub.f32 %v5862_v47, %v5993_v25  ;;  %v344_v14 = vsub.f32 %v5872_v24, %v5993_v25 }
 0x14e   :  { %v345_v29 = vsub.f32 %v5857_v41, %v5993_v25  ;;  %v346_v1 = vsub.f32 %v5868_v23, %v5993_v25  ;;  %v347_v33 = vsub.f32 %v5901_v35, %v5993_v25  ;;  %v349_v19 = vsub.f32 %v5897_v31, %v5993_v25  ;;  %v3464_v41 = vld [vmem:[#allocation3 + $0x92] sm:$0xff]  ;;  %v4104_v31 = vld [vmem:[%s6782_s4] ss:$0 sm:$0xff]  ;;  %s5207_s4 = smov 112  }
 0x14f   :  { %v351_v60 = vadd.f32 1e-05, %v334_v9  ;;  %v342_v47 = vsub.f32 %v5908_v46, %v5993_v25  ;;  %v350_v24 = vsub.f32 %v5910_v51, %v5993_v25  ;;  %v3476_v35 = vpack.c.bf16 %v3464_v41, %v5824_v62 }
 0x151   :  { %5123 = vrsqrt.f32 %v351_v60 }
 0x152   :  { %4779 = vmatmul.mubr.msk.bf16.gmra.mrb[20].mxu0 %vm117_vm0, %v3132_v56 }
 0x153   :  { %4804 = vmatprep.mubr.msk.bf16.mxu0 %vm117_vm0, %v5614_v6  ;;  %v6044_v6 = vld [vmem:[%s6783_s5] ss:$0 sm:$0xff]  ;;  %s5208_s5 = smov 96  }
 0x15a   :  { %4805 = vmatmul.mubr.msk.bf16.vlgmr.msra.gmra.mrb[8].mxu0 %vm117_vm0, %v5618_v20 }
 0x15b   :  { %4808 = vmatprep.mubr.msk.bf16.mxu0 %vm117_vm0, %v5628_v54  ;;  %v5124_v23 = vpop.eup %5123 }
 0x15c   :  { %v366_v46 = vmul.f32 %v5124_v23, %v348_v30  ;;  %v353_v51 = vmul.f32 %v5124_v23, %v335_v39  ;;  %v354_v58 = vmul.f32 %v5124_v23, %v336_v57  ;;  %v355_v59 = vmul.f32 %v5124_v23, %v337_v63 }
 0x15d   :  { %v356_v20 = vmul.f32 %v5124_v23, %v338_v43  ;;  %v357_v7 = vmul.f32 %v5124_v23, %v339_v44  ;;  %v358_v54 = vmul.f32 %v5124_v23, %v340_v55  ;;  %v359_v22 = vmul.f32 %v5124_v23, %v341_v2  ;;  %v6813_v55 = vld [vmem:[#allocation12_spill] sm:$0xff] }
 0x15e   :  { %v389_v0 = vmul.f32 %v4104_v31, %v366_v46  ;;  %v376_v36 = vmul.f32 %v4104_v31, %v353_v51  ;;  %v377_v10 = vmul.f32 %v4104_v31, %v354_v58  ;;  %v378_v38 = vmul.f32 %v4104_v31, %v355_v59 }
 0x15f   :  { %v379_v62 = vmul.f32 %v4104_v31, %v356_v20  ;;  %v380_v17 = vmul.f32 %v4104_v31, %v357_v7  ;;  %v381_v11 = vmul.f32 %v4104_v31, %v358_v54  ;;  %v382_v40 = vmul.f32 %v4104_v31, %v359_v22 }
 0x160   :  { %v412_v18 = vadd.f32 %v6044_v6, %v389_v0  ;;  %v399_v34 = vadd.f32 %v6044_v6, %v376_v36  ;;  %v400_v37 = vadd.f32 %v6044_v6, %v377_v10  ;;  %v401_v49 = vadd.f32 %v6044_v6, %v378_v38 }
 0x161   :  { %v402_v48 = vadd.f32 %v6044_v6, %v379_v62  ;;  %v403_v8 = vadd.f32 %v6044_v6, %v380_v17  ;;  %v404_v42 = vadd.f32 %v6044_v6, %v381_v11  ;;  %v405_v27 = vadd.f32 %v6044_v6, %v382_v40  ;;  %v6103_v40 = vld [vmem:[#allocation6 + $0x10] sm:$0xff]   ;;  %v5119_v11 = vld [vmem:[#allocation6 + $0x28] sm:$0xff]  }
 0x162   :  { %4809 = vmatmul.mubr.msk.bf16.gmra.mrb[12].mxu0 %vm117_vm0, %v3476_v35  ;;  %v428_v52 = vmax.f32 %v412_v18, 0.0  ;;  %v415_v53 = vmax.f32 %v399_v34, 0.0  ;;  %v416_v3 = vmax.f32 %v400_v37, 0.0  ;;  %v417_v4 = vmax.f32 %v401_v49, 0.0 }
 0x163   :  { %4812 = vmatprep.mubr.msk.bf16.mxu0 %vm117_vm0, %v6812_v28  ;;  %v418_v5 = vmax.f32 %v402_v48, 0.0  ;;  %v419_v15 = vmax.f32 %v403_v8, 0.0  ;;  %v420_v21 = vmax.f32 %v404_v42, 0.0  ;;  %v421_v32 = vmax.f32 %v405_v27, 0.0  ;;  %v629_v48 = vld [vmem:[#allocation2 + $0xa1] sm:$0xff] }
 0x164   :  { %547 = vst.msk [vmem:[#allocation2 + $0x101] sm:$0xff] %vm239_vm3, %v428_v52  ;;  %534 = vst.msk [vmem:[#allocation2 + $0x11] sm:$0xff] %vm239_vm3, %v415_v53  ;;  %v361_v25 = vmul.f32 %v5124_v23, %v343_v45  ;;  %v362_v26 = vmul.f32 %v5124_v23, %v344_v14  ;;  %v363_v56 = vmul.f32 %v5124_v23, %v345_v29 }
 0x165   :  { %535 = vst.msk [vmem:[#allocation2 + $0x21] sm:$0xff] %vm239_vm3, %v416_v3  ;;  %536 = vst.msk [vmem:[#allocation2 + $0x31] sm:$0xff] %vm239_vm3, %v417_v4  ;;  %v364_v12 = vmul.f32 %v5124_v23, %v346_v1  ;;  %v365_v13 = vmul.f32 %v5124_v23, %v347_v33  ;;  %v367_v30 = vmul.f32 %v5124_v23, %v349_v19  ;;  %v3472_v1 = vld [vmem:[#allocation3 + $0x132] sm:$0xff]  ;;  %v5118_v4 = vld [vmem:[#allocation6 + $0x20] sm:$0xff]  }
 0x166   :  { %537 = vst.msk [vmem:[#allocation2 + $0x41] sm:$0xff] %vm239_vm3, %v418_v5  ;;  %538 = vst.msk [vmem:[#allocation2 + $0x51] sm:$0xff] %vm239_vm3, %v419_v15  ;;  %v360_v39 = vmul.f32 %v5124_v23, %v342_v47  ;;  %v368_v57 = vmul.f32 %v5124_v23, %v350_v24  ;;  %v384_v63 = vmul.f32 %v4104_v31, %v361_v25  ;;  %v621_v24 = vld [vmem:[#allocation2 + $0x1] sm:$0xff] }
 0x167   :  { %539 = vst.msk [vmem:[#allocation2 + $0x61] sm:$0xff] %vm239_vm3, %v420_v21  ;;  %540 = vst.msk [vmem:[#allocation2 + $0x71] sm:$0xff] %vm239_vm3, %v421_v32  ;;  %v385_v43 = vmul.f32 %v4104_v31, %v362_v26  ;;  %v386_v44 = vmul.f32 %v4104_v31, %v363_v56  ;;  %v387_v9 = vmul.f32 %v4104_v31, %v364_v12 }
 0x168   :  { %v388_v2 = vmul.f32 %v4104_v31, %v365_v13  ;;  %v390_v45 = vmul.f32 %v4104_v31, %v367_v30  ;;  %v383_v14 = vmul.f32 %v4104_v31, %v360_v39  ;;  %v391_v29 = vmul.f32 %v4104_v31, %v368_v57  ;;  %v1205_v30 = vld [vmem:[#allocation2 + $0xa2] sm:$0xff] }
 0x169   :  { %v407_v33 = vadd.f32 %v6044_v6, %v384_v63  ;;  %v408_v60 = vadd.f32 %v6044_v6, %v385_v43  ;;  %v409_v19 = vadd.f32 %v6044_v6, %v386_v44  ;;  %v410_v47 = vadd.f32 %v6044_v6, %v387_v9 }
 0x16a   :  { %4813 = vmatmul.mubr.msk.bf16.gmra.mrb[16].mxu0 %vm117_vm0, %v6813_v55  ;;  %v411_v41 = vadd.f32 %v6044_v6, %v388_v2  ;;  %v413_v23 = vadd.f32 %v6044_v6, %v390_v45  ;;  %v406_v35 = vadd.f32 %v6044_v6, %v383_v14  ;;  %v414_v31 = vadd.f32 %v6044_v6, %v391_v29  ;;  %v1197_v45 = vld [vmem:[#allocation2 + $0x2] sm:$0xff] }
 0x16b   :  { %4816 = vmatprep.mubr.msk.bf16.mxu0 %vm117_vm0, %v5658_v61  ;;  %v423_v46 = vmax.f32 %v407_v33, 0.0  ;;  %v424_v61 = vmax.f32 %v408_v60, 0.0  ;;  %v425_v51 = vmax.f32 %v409_v19, 0.0  ;;  %v426_v58 = vmax.f32 %v410_v47, 0.0  ;;  %v6077_v59 = vld [vmem:[#allocation2 + $0x11] sm:$0xff]  ;;  %v6137_v53 = vld [vmem:[#allocation2 + $0x101] sm:$0xff] }
 0x16c   :  { %v6079_v20 = vld [vmem:[#allocation2 + $0x21] sm:$0xff]  ;;  %v6081_v7 = vld [vmem:[#allocation2 + $0x31] sm:$0xff]  ;;  %v3480_v54 = vpack.c.bf16 %v3472_v1, %v5842_v16  ;;  %v427_v22 = vmax.f32 %v411_v41, 0.0  ;;  %v429_v0 = vmax.f32 %v413_v23, 0.0  ;;  %v422_v36 = vmax.f32 %v406_v35, 0.0 }
 0x16d   :  { %v637_v10 = vpack.c.bf16 %v6077_v59, %v621_v24  ;;  %v6087_v6 = vpack.c.bf16 %v6081_v7, %v6079_v20  ;;  %v6089_v38 = vld [vmem:[#allocation2 + $0x41] sm:$0xff]  ;;  %v6091_v62 = vld [vmem:[#allocation2 + $0x51] sm:$0xff]  ;;  %542 = vst.msk [vmem:[#allocation2 + $0xb1] sm:$0xff] %vm239_vm3, %v423_v46  ;;  %543 = vst.msk [vmem:[#allocation2 + $0xc1] sm:$0xff] %vm239_vm3, %v424_v61  ;;  %v430_v16 = vmax.f32 %v414_v31, 0.0 }
 0x16e   :  { %v6093_v17 = vld [vmem:[#allocation2 + $0x61] sm:$0xff]  ;;  %544 = vst.msk [vmem:[#allocation2 + $0xd1] sm:$0xff] %vm239_vm3, %v425_v51  ;;  %545 = vst.msk [vmem:[#allocation2 + $0xe1] sm:$0xff] %vm239_vm3, %v426_v58  ;;  %v6113_v34 = vpack.c.bf16 %v6091_v62, %v6089_v38  ;;  %v6122_v37 = vld [vmem:[#allocation2 + $0x12] sm:$0xff] }
 0x16f   :  { %546 = vst.msk [vmem:[#allocation2 + $0xf1] sm:$0xff] %vm239_vm3, %v427_v22  ;;  %548 = vst.msk [vmem:[#allocation2 + $0x111] sm:$0xff] %vm239_vm3, %v429_v0  ;;  %4480 = vmatprep.mubr.msk.bf16.mxu1 %vm239_vm3, %v637_v10  ;;  %v6124_v49 = vld [vmem:[#allocation2 + $0x22] sm:$0xff]  ;;  %v6127_v8 = vld [vmem:[#allocation2 + $0x32] sm:$0xff] }
 0x170   :  { %541 = vst.msk [vmem:[#allocation2 + $0x81] sm:$0xff] %vm239_vm3, %v422_v36  ;;  %549 = vst.msk [vmem:[#allocation2 + $0x121] sm:$0xff] %vm239_vm3, %v430_v16  ;;  %4481 = vmatmul.mubr.msk.bf16.vlgmr.msra.gmra.mrb[8].mxu1 %vm239_vm3, %v6087_v6  ;;  %v6129_v42 = vld [vmem:[#allocation2 + $0x42] sm:$0xff]  ;;  %v6131_v27 = vld [vmem:[#allocation2 + $0x52] sm:$0xff]  ;;  %v6238_v32 = vpack.c.bf16 %v6127_v8, %v6124_v49 }
 0x171   :  { %4497 = vmatpush3.bf16.msra.mxu1 %v5808_v50  ;;  %4484 = vmatprep.mubr.msk.bf16.mxu1 %vm239_vm3, %v6113_v34  ;;  %v6135_v50 = vld [vmem:[#allocation2 + $0x71] sm:$0xff]  ;;  %v6139_v3 = vld [vmem:[#allocation2 + $0x62] sm:$0xff]  ;;  %v6242_v52 = vpack.c.bf16 %v6131_v27, %v6129_v42 }
 0x172   :  { %4817 = vmatmul.mubr.msk.bf16.gmra.mrb[20].mxu0 %vm117_vm0, %v3480_v54  ;;  %4554 = vmatprep.subr.bf16.mxu1 %v6103_v40  ;;  %v6159_v12 = vpack.c.bf16 %v6135_v50, %v6093_v17  ;;  %v6166_v57 = vld [vmem:[#allocation2 + $0x102] sm:$0xff]  ;;  %v568_v19 = vld [vmem:[#allocation2 + $0x10] sm:$0xff]  ;;  %v5117_v61 = vld [vmem:[#allocation6 + $0x18] sm:$0xff]  }
 0x173   :  { %v567_v60 = vld [vmem:[#allocation2] sm:$0xff]  ;;  %v570_v23 = vld [vmem:[#allocation2 + $0x30] sm:$0xff]  ;;  %6814 = vst [vmem:[#allocation11_spill] sm:$0xff] %v6242_v52 }
 0x174   :  { %v6143_v5 = vld [vmem:[#allocation2 + $0xb1] sm:$0xff]  ;;  %v6145_v15 = vld [vmem:[#allocation2 + $0xc1] sm:$0xff]  ;;  %v583_v24 = vpack.c.bf16 %v568_v19, %v567_v60 }
 0x175   :  { %v6147_v21 = vld [vmem:[#allocation2 + $0xd1] sm:$0xff]  ;;  %v6151_v25 = vld [vmem:[#allocation2 + $0xe1] sm:$0xff]  ;;  %v641_v39 = vpack.c.bf16 %v6143_v5, %v629_v48 }
 0x176   :  { %v6153_v26 = vld [vmem:[#allocation2 + $0xf1] sm:$0xff]  ;;  %v6172_v43 = vld [vmem:[#allocation2 + $0xc2] sm:$0xff]  ;;  %v6189_v29 = vpack.c.bf16 %v6147_v21, %v6145_v15 }
 0x177   :  { %v6170_v63 = vld [vmem:[#allocation2 + $0xb2] sm:$0xff]  ;;  %v6177_v9 = vld [vmem:[#allocation2 + $0xe2] sm:$0xff]  ;;  %v6193_v1 = vpack.c.bf16 %v6153_v26, %v6151_v25 }
 0x178   :  { %4485 = vmatmul.mubr.msk.bf16.gmra.mrb[12].mxu1 %vm239_vm3, %v6159_v12  ;;  %v6174_v44 = vld [vmem:[#allocation2 + $0xd2] sm:$0xff]  ;;  %v569_v41 = vld [vmem:[#allocation2 + $0x20] sm:$0xff]  ;;  %v1217_v13 = vpack.c.bf16 %v6170_v63, %v1205_v30 }
 0x179   :  { %4488 = vmatprep.mubr.msk.bf16.mxu1 %vm239_vm3, %v641_v39  ;;  %v6179_v55 = vld [vmem:[#allocation2 + $0xf2] sm:$0xff]  ;;  %v571_v35 = vld [vmem:[#allocation2 + $0x40] sm:$0xff]  ;;  %v6208_v46 = vpack.c.bf16 %v570_v23, %v569_v41  ;;  %v6257_v56 = vpack.c.bf16 %v6174_v44, %v6172_v43  ;;  %v1561_v18 = vpack.c.bf16 %v569_v41, %v568_v19 }
 0x17a   :  { %v6199_v33 = vld [vmem:[#allocation2 + $0x111] sm:$0xff]  ;;  %v573_v58 = vld [vmem:[#allocation2 + $0x60] sm:$0xff] }
 0x17b   :  { %v6203_v47 = vpack.c.bf16 %v6199_v33, %v6137_v53  ;;  %v572_v31 = vld [vmem:[#allocation2 + $0x50] sm:$0xff]  ;;  %v575_v22 = vld [vmem:[#allocation2 + $0xa0] sm:$0xff]  ;;  %6816 = vst [vmem:[#allocation13_spill] sm:$0xff] %v6257_v56 }
 0x17c   :  { %v6210_v51 = vpack.c.bf16 %v572_v31, %v571_v35  ;;  %v574_v54 = vld [vmem:[#allocation2 + $0x70] sm:$0xff]  ;;  %v577_v16 = vld [vmem:[#allocation2 + $0xc0] sm:$0xff] }
 0x17d   :  { %v576_v0 = vld [vmem:[#allocation2 + $0xb0] sm:$0xff]  ;;  %v6217_v36 = vpack.c.bf16 %v574_v54, %v573_v58  ;;  %v579_v39 = vld [vmem:[#allocation2 + $0xe0] sm:$0xff] }
 0x17e   :  { %v587_v10 = vpack.c.bf16 %v576_v0, %v575_v22  ;;  %v578_v48 = vld [vmem:[#allocation2 + $0xd0] sm:$0xff]  ;;  %v581_v22 = vld [vmem:[#allocation2 + $0x100] sm:$0xff] }
 0x17f   :  { %v6222_v60 = vpack.c.bf16 %v578_v48, %v577_v16  ;;  %v582_v14 = vld [vmem:[#allocation2 + $0x110] sm:$0xff]  ;;  %v1566_v19 = vpack.c.bf16 %v579_v39, %v578_v48  ;;  %v6282_v41 = vld [vmem:[#allocation2 + $0x120] sm:$0xff] }
 0x180   :  { %4489 = vmatmul.mubr.msk.bf16.gmra.mrb[16].mxu1 %vm239_vm3, %v6189_v29  ;;  %v6230_v2 = vpack.c.bf16 %v582_v14, %v581_v22  ;;  %v1212_v30 = vld [vmem:[#allocation2 + $0x112] sm:$0xff] }
 0x181   :  { %4492 = vmatprep.mubr.msk.bf16.mxu1 %vm239_vm3, %v6193_v1  ;;  %v6268_v28 = vpack.c.bf16 %v1212_v30, %v6166_v57 }
 0x188   :  { %4493 = vmatmul.mubr.msk.bf16.gmra.mrb[20].mxu1 %vm239_vm3, %v6203_v47 }
 0x189   :  { %4498 = vmatprep.mubr.msk.bf16.mxu1 %vm239_vm3, %v583_v24 }
 0x190   :  { %4499 = vmatmul.mubr.msk.bf16.vlgmr.msra.gmra.mrb[8].mxu1 %vm239_vm3, %v6208_v46 }
 0x191   :  { %4555 = vmatpush3.bf16.msra.mxu1 %v6103_v40  ;;  %4502 = vmatprep.mubr.msk.bf16.mxu1 %vm239_vm3, %v6210_v51  ;;  %v580_v40 = vld [vmem:[#allocation2 + $0xf0] sm:$0xff] }
 0x192   :  { %4592 = vmatprep.subr.bf16.mxu1 %v5117_v61  ;;  %v6224_v24 = vpack.c.bf16 %v580_v40, %v579_v39 }
 0x198   :  { %4503 = vmatmul.mubr.msk.bf16.gmra.mrb[12].mxu1 %vm239_vm3, %v6217_v36 }
 0x199   :  { %4506 = vmatprep.mubr.msk.bf16.mxu1 %vm239_vm3, %v587_v10  ;;  %v1213_v10 = vpack.c.bf16 %v6122_v37, %v1197_v45  ;;  %v1204_v45 = vld [vmem:[#allocation2 + $0x72] sm:$0xff] }
 0x1a0   :  { %4507 = vmatmul.mubr.msk.bf16.gmra.mrb[16].mxu1 %vm239_vm3, %v6222_v60 }
 0x1a1   :  { %4510 = vmatprep.mubr.msk.bf16.mxu1 %vm239_vm3, %v6224_v24 }
 0x1a8   :  { %4511 = vmatmul.mubr.msk.bf16.gmra.mrb[20].mxu1 %vm239_vm3, %v6230_v2 }
 0x1a9   :  { %4556 = vmatprep.mubr.msk.bf16.mxu1 %vm239_vm3, %v1213_v10  ;;  %v6249_v10 = vpack.c.bf16 %v1204_v45, %v6139_v3 }
 0x1ab   :  { %6815 = vst [vmem:[#allocation12_spill] sm:$0xff] %v6249_v10 }
 0x1b0   :  { %4557 = vmatmul.mubr.msk.bf16.vlgmr.msra.gmra.mrb[8].mxu1 %vm239_vm3, %v6238_v32 }
 0x1b1   :  { %4593 = vmatpush3.bf16.msra.mxu1 %v5117_v61  ;;  %4560 = vmatprep.mubr.msk.bf16.mxu1 %vm239_vm3, %v6242_v52  ;;  %v6261_v61 = vpack.c.bf16 %v6179_v55, %v6177_v9  ;;  %v1565_v52 = vpack.c.bf16 %v577_v16, %v576_v0 }
 0x1b2   :  { %4630 = vmatprep.subr.bf16.mxu1 %v5118_v4 }
 0x1b3   :  { %6817 = vst [vmem:[#allocation14_spill] sm:$0xff] %v6261_v61 }
 0x1b8   :  { %4561 = vmatmul.mubr.msk.bf16.gmra.mrb[12].mxu1 %vm239_vm3, %v6249_v10  ;;  %v1563_v10 = vpack.c.bf16 %v573_v58, %v572_v31 }
 0x1b9   :  { %4564 = vmatprep.mubr.msk.bf16.mxu1 %vm239_vm3, %v1217_v13  ;;  %v1562_v13 = vpack.c.bf16 %v571_v35, %v570_v23  ;;  %v6818_v23 = vpack.c.bf16 %v6079_v20, %v6077_v59  ;;  %v6820_v35 = vpack.c.bf16 %v6093_v17, %v6091_v62  ;;  %v6821_v20 = vpack.c.bf16 %v6145_v15, %v6143_v5  ;;  %v6315_v62 = vld [vmem:[#allocation2 + $0x121] sm:$0xff] }
 0x1ba   :  { %v1916_v17 = vpack.c.bf16 %v6315_v62, %v6199_v33  ;;  %v6825_v5 = vpack.c.bf16 %v6129_v42, %v6127_v8  ;;  %v6332_v15 = vld [vmem:[#allocation2 + $0x82] sm:$0xff]  ;;  %v6829_v8 = vpack.c.bf16 %v6166_v57, %v6179_v55 }
 0x1bb   :  { %v6348_v42 = vld [vmem:[#allocation2 + $0x122] sm:$0xff] }
 0x1bc   :  { %v6370_v55 = vld [vmem:[#allocation6 + $0x40] sm:$0xff]  }
 0x1c0   :  { %4565 = vmatmul.mubr.msk.bf16.gmra.mrb[16].mxu1 %vm239_vm3, %v6257_v56 }
 0x1c1   :  { %4568 = vmatprep.mubr.msk.bf16.mxu1 %vm239_vm3, %v6261_v61  ;;  %v6275_v61 = vld [vmem:[#allocation2 + $0x80] sm:$0xff] }
 0x1c2   :  { %v1564_v56 = vpack.c.bf16 %v6275_v61, %v574_v54 }
 0x1c8   :  { %4569 = vmatmul.mubr.msk.bf16.gmra.mrb[20].mxu1 %vm239_vm3, %v6268_v28 }
 0x1c9   :  { %4594 = vmatprep.mubr.msk.bf16.mxu1 %vm239_vm3, %v1561_v18  ;;  %v1567_v18 = vpack.c.bf16 %v581_v22, %v580_v40 }
 0x1d0   :  { %4595 = vmatmul.mubr.msk.bf16.vlgmr.msra.gmra.mrb[8].mxu1 %vm239_vm3, %v1562_v13 }
 0x1d1   :  { %4631 = vmatpush3.bf16.msra.mxu1 %v5118_v4  ;;  %4598 = vmatprep.mubr.msk.bf16.mxu1 %vm239_vm3, %v1563_v10  ;;  %v1568_v4 = vpack.c.bf16 %v6282_v41, %v582_v14  ;;  %v6298_v14 = vld [vmem:[#allocation2 + $0x81] sm:$0xff] }
 0x1d2   :  { %4668 = vmatprep.subr.bf16.mxu1 %v5119_v11  ;;  %v1912_v59 = vpack.c.bf16 %v6298_v14, %v6135_v50  ;;  %v5121_v50 = vld [vmem:[#allocation6 + $0x38] sm:$0xff]  }
 0x1d8   :  { %4599 = vmatmul.mubr.msk.bf16.gmra.mrb[12].mxu1 %vm239_vm3, %v1564_v56  ;;  %v5120_v56 = vld [vmem:[#allocation6 + $0x30] sm:$0xff]  }
 0x1d9   :  { %4602 = vmatprep.mubr.msk.bf16.mxu1 %vm239_vm3, %v1565_v52  ;;  %v6819_v52 = vpack.c.bf16 %v6089_v38, %v6081_v7  ;;  %v6822_v7 = vpack.c.bf16 %v6151_v25, %v6147_v21  ;;  %v6823_v38 = vpack.c.bf16 %v6137_v53, %v6153_v26  ;;  %v6826_v53 = vpack.c.bf16 %v6139_v3, %v6131_v27 }
 0x1da   :  { %v2260_v21 = vpack.c.bf16 %v6332_v15, %v1204_v45  ;;  %v2264_v27 = vpack.c.bf16 %v6348_v42, %v1212_v30 }
 0x1e0   :  { %4603 = vmatmul.mubr.msk.bf16.gmra.mrb[16].mxu1 %vm239_vm3, %v1566_v19 }
 0x1e1   :  { %4606 = vmatprep.mubr.msk.bf16.mxu1 %vm239_vm3, %v1567_v18 }
 0x1e8   :  { %4607 = vmatmul.mubr.msk.bf16.gmra.mrb[20].mxu1 %vm239_vm3, %v1568_v4 }
 0x1e9   :  { %4632 = vmatprep.mubr.msk.bf16.mxu1 %vm239_vm3, %v6818_v23 }
 0x1f0   :  { %4633 = vmatmul.mubr.msk.bf16.vlgmr.msra.gmra.mrb[8].mxu1 %vm239_vm3, %v6819_v52 }
 0x1f1   :  { %4669 = vmatpush3.bf16.msra.mxu1 %v5119_v11  ;;  %4636 = vmatprep.mubr.msk.bf16.mxu1 %vm239_vm3, %v6820_v35  ;;  %v6824_v11 = vpack.c.bf16 %v6124_v49, %v6122_v37  ;;  %v6827_v37 = vpack.c.bf16 %v6172_v43, %v6170_v63  ;;  %v6828_v49 = vpack.c.bf16 %v6177_v9, %v6174_v44 }
 0x1f2   :  { %4706 = vmatprep.subr.bf16.mxu1 %v5120_v56 }
 0x1f8   :  { %4637 = vmatmul.mubr.msk.bf16.gmra.mrb[12].mxu1 %vm239_vm3, %v1912_v59 }
 0x1f9   :  { %4640 = vmatprep.mubr.msk.bf16.mxu1 %vm239_vm3, %v6821_v20 }
 0x200   :  { %4641 = vmatmul.mubr.msk.bf16.gmra.mrb[16].mxu1 %vm239_vm3, %v6822_v7 }
 0x201   :  { %4644 = vmatprep.mubr.msk.bf16.mxu1 %vm239_vm3, %v6823_v38 }
 0x208   :  { %4645 = vmatmul.mubr.msk.bf16.gmra.mrb[20].mxu1 %vm239_vm3, %v1916_v17 }
 0x209   :  { %4670 = vmatprep.mubr.msk.bf16.mxu1 %vm239_vm3, %v6824_v11 }
 0x210   :  { %4671 = vmatmul.mubr.msk.bf16.vlgmr.msra.gmra.mrb[8].mxu1 %vm239_vm3, %v6825_v5 }
 0x211   :  { %4707 = vmatpush3.bf16.msra.mxu1 %v5120_v56  ;;  %4674 = vmatprep.mubr.msk.bf16.mxu1 %vm239_vm3, %v6826_v53 }
 0x212   :  { %4744 = vmatprep.subr.bf16.mxu1 %v5121_v50 }
 0x218   :  { %4675 = vmatmul.mubr.msk.bf16.gmra.mrb[12].mxu1 %vm239_vm3, %v2260_v21 }
 0x219   :  { %4678 = vmatprep.mubr.msk.bf16.mxu1 %vm239_vm3, %v6827_v37 }
 0x220   :  { %4679 = vmatmul.mubr.msk.bf16.gmra.mrb[16].mxu1 %vm239_vm3, %v6828_v49 }
 0x221   :  { %4682 = vmatprep.mubr.msk.bf16.mxu1 %vm239_vm3, %v6829_v8 }
 0x228   :  { %4683 = vmatmul.mubr.msk.bf16.gmra.mrb[20].mxu1 %vm239_vm3, %v2264_v27 }
 0x229   :  { %4708 = vmatprep.mubr.msk.bf16.mxu1 %vm239_vm3, %v6208_v46 }
 0x22d   :  { %v6354_v3 = vpop.f32.mrb[8].mxu0 }
 0x22e   :  { %v6356_v25 = vpop.f32.mrb[9].mxu0  ;;  %v3852_v26 = vmul.f32 %v6354_v3, %v6354_v3  ;;  %v3802_v44 = vsel %vm3635_vm6, %v6354_v3, 0.0 }
 0x22f   :  { %v3799_v57 = vsel %vm3635_vm6, %v6356_v25, 0.0  ;;  %v3850_v63 = vmul.f32 %v6356_v25, %v6356_v25  ;;  %v6364_v43 = vpop.f32.mrb[10].mxu0 }
 0x230   :  { %v6368_v9 = vpop.f32.mrb[11].mxu0  ;;  %v3853_v31 = vmul.f32 %v6364_v43, %v6364_v43  ;;  %4709 = vmatmul.mubr.msk.bf16.vlgmr.msra.gmra.mrb[8].mxu1 %vm239_vm3, %v6210_v51  ;;  %v3869_v0 = vsel %vm3635_vm6, %v3852_v26, 0.0  ;;  %v3804_v16 = vsel %vm3635_vm6, %v6364_v43, 0.0  ;;  %v2597_v51 = vld [vmem:[#allocation2 + $0x90] sm:$0xff] }
 0x231   :  { %v3866_v33 = vsel %vm3635_vm6, %v3850_v63, 0.0  ;;  %v3800_v46 = vsel %vm3635_vm6, %v6368_v9, 0.0  ;;  %v3851_v58 = vmul.f32 %v6368_v9, %v6368_v9  ;;  %4745 = vmatpush3.bf16.msra.mxu1 %v5121_v50  ;;  %4712 = vmatprep.mubr.msk.bf16.mxu1 %vm239_vm3, %v6217_v36  ;;  %v2609_v59 = vpack.c.bf16 %v2597_v51, %v6275_v61 }
 0x232   :  { %v3801_v54 = vadd.f32 %v3800_v46, %v3799_v57  ;;  %4782 = vmatprep.subr.bf16.mxu1 %v6370_v55  ;;  %v3871_v22 = vsel %vm3635_vm6, %v3853_v31, 0.0 }
 0x233   :  { %v3867_v48 = vsel %vm3635_vm6, %v3851_v58, 0.0 }
 0x234   :  { %v3803_v39 = vadd.f32 %v3802_v44, %v3801_v54  ;;  %v3868_v40 = vadd.f32 %v3867_v48, %v3866_v33 }
 0x235   :  { %v6389_v45 = vpop.f32.mrb[12].mxu0 }
 0x236   :  { %v3870_v10 = vadd.f32 %v3869_v0, %v3868_v40  ;;  %v6391_v30 = vpop.f32.mrb[13].mxu0  ;;  %v3805_v13 = vadd.f32 %v3804_v16, %v3803_v39  ;;  %v3856_v19 = vmul.f32 %v6389_v45, %v6389_v45  ;;  %v3810_v23 = vsel %vm3635_vm6, %v6389_v45, 0.0 }
 0x237   :  { %v3806_v18 = vsel %vm3635_vm6, %v6391_v30, 0.0  ;;  %v3854_v36 = vmul.f32 %v6391_v30, %v6391_v30  ;;  %v6399_v4 = vpop.f32.mrb[14].mxu0 }
 0x238   :  { %v3807_v56 = vadd.f32 %v3806_v18, %v3805_v13  ;;  %v3872_v52 = vadd.f32 %v3871_v22, %v3870_v10  ;;  %v6403_v35 = vpop.f32.mrb[15].mxu0  ;;  %v3857_v7 = vmul.f32 %v6399_v4, %v6399_v4  ;;  %4713 = vmatmul.mubr.msk.bf16.gmra.mrb[12].mxu1 %vm239_vm3, %v2609_v59  ;;  %v3877_v5 = vsel %vm3635_vm6, %v3856_v19, 0.0 }
 0x239   :  { %v3873_v20 = vsel %vm3635_vm6, %v3854_v36, 0.0  ;;  %v3808_v38 = vsel %vm3635_vm6, %v6403_v35, 0.0  ;;  %v3855_v17 = vmul.f32 %v6403_v35, %v6403_v35  ;;  %v3812_v61 = vsel %vm3635_vm6, %v6399_v4, 0.0  ;;  %4716 = vmatprep.mubr.msk.bf16.mxu1 %vm239_vm3, %v6222_v60 }
 0x23a   :  { %v3874_v11 = vadd.f32 %v3873_v20, %v3872_v52  ;;  %v3809_v50 = vadd.f32 %v3808_v38, %v3807_v56  ;;  %v3879_v49 = vsel %vm3635_vm6, %v3857_v7, 0.0  ;;  %v2605_v56 = vld [vmem:[#allocation2 + $0x130] sm:$0xff] }
 0x23b   :  { %v3875_v53 = vsel %vm3635_vm6, %v3855_v17, 0.0 }
 0x23c   :  { %v3811_v21 = vadd.f32 %v3810_v23, %v3809_v50  ;;  %v3876_v37 = vadd.f32 %v3875_v53, %v3874_v11 }
 0x23d   :  { %v6421_v8 = vpop.f32.mrb[16].mxu0 }
 0x23e   :  { %v3878_v27 = vadd.f32 %v3877_v5, %v3876_v37  ;;  %v6423_v26 = vpop.f32.mrb[17].mxu0  ;;  %v3813_v57 = vadd.f32 %v3812_v61, %v3811_v21  ;;  %v3860_v63 = vmul.f32 %v6421_v8, %v6421_v8  ;;  %v3818_v31 = vsel %vm3635_vm6, %v6421_v8, 0.0 }
 0x23f   :  { %v3814_v44 = vsel %vm3635_vm6, %v6423_v26, 0.0  ;;  %v3858_v33 = vmul.f32 %v6423_v26, %v6423_v26  ;;  %v6431_v60 = vpop.f32.mrb[18].mxu0  ;;  %v2613_v61 = vpack.c.bf16 %v2605_v56, %v6282_v41 }
 0x240   :  { %v3815_v46 = vadd.f32 %v3814_v44, %v3813_v57  ;;  %v3880_v58 = vadd.f32 %v3879_v49, %v3878_v27  ;;  %v6435_v54 = vpop.f32.mrb[19].mxu0  ;;  %v3861_v16 = vmul.f32 %v6431_v60, %v6431_v60  ;;  %4717 = vmatmul.mubr.msk.bf16.gmra.mrb[16].mxu1 %vm239_vm3, %v6224_v24  ;;  %v3885_v51 = vsel %vm3635_vm6, %v3860_v63, 0.0 }
 0x241   :  { %v3881_v0 = vsel %vm3635_vm6, %v3858_v33, 0.0  ;;  %v3816_v48 = vsel %vm3635_vm6, %v6435_v54, 0.0  ;;  %v3859_v39 = vmul.f32 %v6435_v54, %v6435_v54  ;;  %v3820_v10 = vsel %vm3635_vm6, %v6431_v60, 0.0  ;;  %4720 = vmatprep.mubr.msk.bf16.mxu1 %vm239_vm3, %v6230_v2 }
 0x242   :  { %v3882_v40 = vadd.f32 %v3881_v0, %v3880_v58  ;;  %v3817_v22 = vadd.f32 %v3816_v48, %v3815_v46  ;;  %v3887_v36 = vsel %vm3635_vm6, %v3861_v16, 0.0 }
 0x243   :  { %v3883_v13 = vsel %vm3635_vm6, %v3859_v39, 0.0 }
 0x244   :  { %v3819_v19 = vadd.f32 %v3818_v31, %v3817_v22  ;;  %v3884_v18 = vadd.f32 %v3883_v13, %v3882_v40 }
 0x245   :  { %v6453_v23 = vpop.f32.mrb[20].mxu0 }
 0x246   :  { %v3886_v52 = vadd.f32 %v3885_v51, %v3884_v18  ;;  %v6455_v59 = vpop.f32.mrb[21].mxu0  ;;  %v3821_v24 = vadd.f32 %v3820_v10, %v3819_v19  ;;  %v3864_v20 = vmul.f32 %v6453_v23, %v6453_v23  ;;  %v3826_v17 = vsel %vm3635_vm6, %v6453_v23, 0.0  ;;  %v2946_v51 = vld [vmem:[#allocation2 + $0x91] sm:$0xff] }
 0x247   :  { %v3822_v7 = vsel %vm3635_vm6, %v6455_v59, 0.0  ;;  %v3862_v2 = vmul.f32 %v6455_v59, %v6455_v59  ;;  %v6463_v38 = vpop.f32.mrb[22].mxu0  ;;  %v2958_v19 = vpack.c.bf16 %v2946_v51, %v6298_v14  ;;  %v6830_v14 = vld [vmem:[#allocation11_spill] sm:$0xff] }
 0x248   :  { %v3823_v11 = vadd.f32 %v3822_v7, %v3821_v24  ;;  %v3888_v50 = vadd.f32 %v3887_v36, %v3886_v52  ;;  %v6467_v5 = vpop.f32.mrb[23].mxu0  ;;  %v3865_v21 = vmul.f32 %v6463_v38, %v6463_v38  ;;  %4721 = vmatmul.mubr.msk.bf16.gmra.mrb[20].mxu1 %vm239_vm3, %v2613_v61  ;;  %v3893_v63 = vsel %vm3635_vm6, %v3864_v20, 0.0  ;;  %v3294_v24 = vld [vmem:[#allocation2 + $0x92] sm:$0xff] }
 0x249   :  { %v3889_v53 = vsel %vm3635_vm6, %v3862_v2, 0.0  ;;  %v3824_v37 = vsel %vm3635_vm6, %v6467_v5, 0.0  ;;  %v3863_v49 = vmul.f32 %v6467_v5, %v6467_v5  ;;  %v3828_v41 = vsel %vm3635_vm6, %v6463_v38, 0.0  ;;  %4746 = vmatprep.mubr.msk.bf16.mxu1 %vm239_vm3, %v6087_v6 }
 0x24a   :  { %v3890_v27 = vadd.f32 %v3889_v53, %v3888_v50  ;;  %v3825_v57 = vadd.f32 %v3824_v37, %v3823_v11  ;;  %v3895_v46 = vsel %vm3635_vm6, %v3865_v21, 0.0 }
 0x24b   :  { %v3891_v44 = vsel %vm3635_vm6, %v3863_v49, 0.0 }
 0x24c   :  { %v3827_v33 = vadd.f32 %v3826_v17, %v3825_v57  ;;  %v3892_v31 = vadd.f32 %v3891_v44, %v3890_v27 }
 0x24e   :  { %v3829_v58 = vadd.f32 %v3828_v41, %v3827_v33  ;;  %v3894_v0 = vadd.f32 %v3893_v63, %v3892_v31 }
 0x250   :  { %v3830_v16 = vrot.slane %v3829_v58, 4  ;;  %v3896_v48 = vadd.f32 %v3895_v46, %v3894_v0  ;;  %4747 = vmatmul.mubr.msk.bf16.vlgmr.msra.gmra.mrb[8].mxu1 %vm239_vm3, %v6113_v34 }
 0x251   :  { %4783 = vmatpush3.bf16.msra.mxu1 %v6370_v55  ;;  %4750 = vmatprep.mubr.msk.bf16.mxu1 %vm239_vm3, %v6159_v12  ;;  %v2954_v12 = vld [vmem:[#allocation2 + $0x131] sm:$0xff]  ;;  %v6831_v55 = vld [vmem:[#allocation12_spill] sm:$0xff] }
 0x252   :  { %v3831_v39 = vadd.f32 %v3830_v16, %v3829_v58  ;;  %v3897_v40 = vrot.slane %v3896_v48, 4 }
 0x254   :  { %v3832_v22 = vrot.slane %v3831_v39, 2  ;;  %v3898_v6 = vadd.f32 %v3897_v40, %v3896_v48 }
 0x256   :  { %v3833_v10 = vadd.f32 %v3832_v22, %v3831_v39  ;;  %v3899_v13 = vrot.slane %v3898_v6, 2 }
 0x258   :  { %v3834_v18 = vrot.slane %v3833_v10, 1  ;;  %v3900_v36 = vadd.f32 %v3899_v13, %v3898_v6  ;;  %4751 = vmatmul.mubr.msk.bf16.gmra.mrb[12].mxu1 %vm239_vm3, %v2958_v19 }
 0x259   :  { %4754 = vmatprep.mubr.msk.bf16.mxu1 %vm239_vm3, %v6189_v29  ;;  %v2962_v29 = vpack.c.bf16 %v2954_v12, %v6315_v62  ;;  %v6833_v62 = vld [vmem:[#allocation14_spill] sm:$0xff] }
 0x25a   :  { %v6492_v56 = vadd.f32 %v3834_v18, %v3833_v10  ;;  %v3901_v52 = vrot.slane %v3900_v36, 1 }
 0x25c   :  { %3837 = vrot.lane.b32.xlu1 %v6492_v56, %s5207_s4  ;;  %v6498_v34 = vadd.f32 %v3901_v52, %v3900_v36 }
 0x25e   :  { %3904 = vrot.lane.b32.xlu0 %v6498_v34, %s5207_s4 }
 0x260   :  { %3841 = vrot.lane.b32.xlu1 %v6492_v56, %s5208_s5  ;;  %4755 = vmatmul.mubr.msk.bf16.gmra.mrb[16].mxu1 %vm239_vm3, %v6193_v1  ;;  %v3306_v1 = vpack.c.bf16 %v3294_v24, %v6332_v15 }
 0x261   :  { %4758 = vmatprep.mubr.msk.bf16.mxu1 %vm239_vm3, %v6203_v47  ;;  %v6832_v47 = vld [vmem:[#allocation13_spill] sm:$0xff] }
 0x268   :  { %4759 = vmatmul.mubr.msk.bf16.gmra.mrb[20].mxu1 %vm239_vm3, %v2962_v29 }
 0x269   :  { %4784 = vmatprep.mubr.msk.bf16.mxu1 %vm239_vm3, %v6238_v32  ;;  %v3302_v32 = vld [vmem:[#allocation2 + $0x132] sm:$0xff] }
 0x26a   :  { %v3310_v20 = vpack.c.bf16 %v3302_v32, %v6348_v42 }
 0x270   :  { %4785 = vmatmul.mubr.msk.bf16.vlgmr.msra.gmra.mrb[8].mxu1 %vm239_vm3, %v6830_v14 }
 0x271   :  { %4788 = vmatprep.mubr.msk.bf16.mxu1 %vm239_vm3, %v6831_v55 }
 0x278   :  { %4789 = vmatmul.mubr.msk.bf16.gmra.mrb[12].mxu1 %vm239_vm3, %v3306_v1 }
 0x279   :  { %4792 = vmatprep.mubr.msk.bf16.mxu1 %vm239_vm3, %v6832_v47 }
 0x280   :  { %4793 = vmatmul.mubr.msk.bf16.gmra.mrb[16].mxu1 %vm239_vm3, %v6833_v62 }
 0x281   :  { %4796 = vmatprep.mubr.msk.bf16.mxu1 %vm239_vm3, %v6268_v28 }
 0x288   :  { %4797 = vmatmul.mubr.msk.bf16.gmra.mrb[20].mxu1 %vm239_vm3, %v3310_v20 }
 0x343   :  { %v6526_v7 = vpop.f32.mrb[8].mxu1 }
 0x344   :  { %v6528_v2 = vpop.f32.mrb[9].mxu1  ;;  %v3690_v50 = vmul.f32 %v6526_v7, %v6526_v7  ;;  %v3639_v21 = vsel %vm3635_vm6, %v6526_v7, 0.0 }
 0x345   :  { %v3688_v15 = vmul.f32 %v6528_v2, %v6528_v2  ;;  %v6532_v17 = vpop.f32.mrb[10].mxu1  ;;  %v3636_v28 = vsel %vm3635_vm6, %v6528_v2, 0.0 }
 0x346   :  { %v6534_v11 = vpop.f32.mrb[11].mxu1  ;;  %v3691_v49 = vmul.f32 %v6532_v17, %v6532_v17  ;;  %v3707_v41 = vsel %vm3635_vm6, %v3690_v50, 0.0  ;;  %v3641_v44 = vsel %vm3635_vm6, %v6532_v17, 0.0 }
 0x347   :  { %v3637_v42 = vsel %vm3635_vm6, %v6534_v11, 0.0  ;;  %v3689_v61 = vmul.f32 %v6534_v11, %v6534_v11  ;;  %v3704_v37 = vsel %vm3635_vm6, %v3688_v15, 0.0 }
 0x348   :  { %v3638_v53 = vadd.f32 %v3637_v42, %v3636_v28  ;;  %v3709_v0 = vsel %vm3635_vm6, %v3691_v49, 0.0 }
 0x349   :  { %v3705_v27 = vsel %vm3635_vm6, %v3689_v61, 0.0 }
 0x34a   :  { %v3640_v57 = vadd.f32 %v3639_v21, %v3638_v53  ;;  %v3706_v63 = vadd.f32 %v3705_v27, %v3704_v37 }
 0x34b   :  { %v6553_v33 = vpop.f32.mrb[12].mxu1 }
 0x34c   :  { %v3708_v31 = vadd.f32 %v3707_v41, %v3706_v63  ;;  %v6555_v46 = vpop.f32.mrb[13].mxu1  ;;  %v3642_v58 = vadd.f32 %v3641_v44, %v3640_v57  ;;  %v3694_v51 = vmul.f32 %v6553_v33, %v6553_v33  ;;  %v3647_v52 = vsel %vm3635_vm6, %v6553_v33, 0.0 }
 0x34d   :  { %v3643_v16 = vsel %vm3635_vm6, %v6555_v46, 0.0  ;;  %v3692_v48 = vmul.f32 %v6555_v46, %v6555_v46  ;;  %v6562_v39 = vpop.f32.mrb[14].mxu1 }
 0x34e   :  { %v3644_v40 = vadd.f32 %v3643_v16, %v3642_v58  ;;  %v3710_v22 = vadd.f32 %v3709_v0, %v3708_v31  ;;  %v6564_v6 = vpop.f32.mrb[15].mxu1  ;;  %v3695_v12 = vmul.f32 %v6562_v39, %v6562_v39  ;;  %v3715_v24 = vsel %vm3635_vm6, %v3694_v51, 0.0 }
 0x34f   :  { %v3711_v10 = vsel %vm3635_vm6, %v3692_v48, 0.0  ;;  %v3645_v13 = vsel %vm3635_vm6, %v6564_v6, 0.0  ;;  %v3693_v19 = vmul.f32 %v6564_v6, %v6564_v6  ;;  %v3649_v1 = vsel %vm3635_vm6, %v6562_v39, 0.0 }
 0x350   :  { %v3712_v18 = vadd.f32 %v3711_v10, %v3710_v22  ;;  %v3646_v36 = vadd.f32 %v3645_v13, %v3644_v40  ;;  %v3717_v15 = vsel %vm3635_vm6, %v3695_v12, 0.0 }
 0x351   :  { %v3713_v29 = vsel %vm3635_vm6, %v3693_v19, 0.0 }
 0x352   :  { %v3648_v14 = vadd.f32 %v3647_v52, %v3646_v36  ;;  %v3714_v55 = vadd.f32 %v3713_v29, %v3712_v18 }
 0x353   :  { %v6581_v47 = vpop.f32.mrb[16].mxu1 }
 0x354   :  { %v3716_v62 = vadd.f32 %v3715_v24, %v3714_v55  ;;  %v6583_v32 = vpop.f32.mrb[17].mxu1  ;;  %v3650_v20 = vadd.f32 %v3649_v1, %v3648_v14  ;;  %v3698_v37 = vmul.f32 %v6581_v47, %v6581_v47  ;;  %v3655_v44 = vsel %vm3635_vm6, %v6581_v47, 0.0 }
 0x355   :  { %v3651_v50 = vsel %vm3635_vm6, %v6583_v32, 0.0  ;;  %v3696_v28 = vmul.f32 %v6583_v32, %v6583_v32  ;;  %v6590_v42 = vpop.f32.mrb[18].mxu1 }
 0x356   :  { %v3652_v61 = vadd.f32 %v3651_v50, %v3650_v20  ;;  %v3718_v53 = vadd.f32 %v3717_v15, %v3716_v62  ;;  %v6592_v21 = vpop.f32.mrb[19].mxu1  ;;  %v3699_v31 = vmul.f32 %v6590_v42, %v6590_v42  ;;  %v3723_v48 = vsel %vm3635_vm6, %v3698_v37, 0.0 }
 0x357   :  { %v3719_v49 = vsel %vm3635_vm6, %v3696_v28, 0.0  ;;  %v3653_v27 = vsel %vm3635_vm6, %v6592_v21, 0.0  ;;  %v3697_v57 = vmul.f32 %v6592_v21, %v6592_v21  ;;  %v3657_v40 = vsel %vm3635_vm6, %v6590_v42, 0.0 }
 0x358   :  { %v3720_v63 = vadd.f32 %v3719_v49, %v3718_v53  ;;  %v3654_v41 = vadd.f32 %v3653_v27, %v3652_v61  ;;  %v3725_v19 = vsel %vm3635_vm6, %v3699_v31, 0.0 }
 0x359   :  { %v3721_v58 = vsel %vm3635_vm6, %v3697_v57, 0.0 }
 0x35a   :  { %v3656_v0 = vadd.f32 %v3655_v44, %v3654_v41  ;;  %v3722_v16 = vadd.f32 %v3721_v58, %v3720_v63 }
 0x35b   :  { %v6609_v22 = vpop.f32.mrb[20].mxu1 }
 0x35c   :  { %v3724_v51 = vadd.f32 %v3723_v48, %v3722_v16  ;;  %v6611_v10 = vpop.f32.mrb[21].mxu1  ;;  %v3658_v13 = vadd.f32 %v3657_v40, %v3656_v0  ;;  %v3702_v55 = vmul.f32 %v6609_v22, %v6609_v22  ;;  %v3663_v50 = vsel %vm3635_vm6, %v6609_v22, 0.0 }
 0x35d   :  { %v3659_v18 = vsel %vm3635_vm6, %v6611_v10, 0.0  ;;  %v3700_v36 = vmul.f32 %v6611_v10, %v6611_v10  ;;  %v6618_v52 = vpop.f32.mrb[22].mxu1 }
 0x35e   :  { %v3660_v12 = vadd.f32 %v3659_v18, %v3658_v13  ;;  %v3726_v29 = vadd.f32 %v3725_v19, %v3724_v51  ;;  %v6620_v14 = vpop.f32.mrb[23].mxu1  ;;  %v3703_v28 = vmul.f32 %v6618_v52, %v6618_v52  ;;  %v3731_v49 = vsel %vm3635_vm6, %v3702_v55, 0.0  ;;  %v3905_v55 = vpop.permute.xlu0 %3904 }
 0x35f   :  { %v3727_v24 = vsel %vm3635_vm6, %v3700_v36, 0.0  ;;  %v3661_v1 = vsel %vm3635_vm6, %v6620_v14, 0.0  ;;  %v3701_v62 = vmul.f32 %v6620_v14, %v6620_v14  ;;  %v3665_v27 = vsel %vm3635_vm6, %v6618_v52, 0.0 }
 0x360   :  { %v3728_v20 = vadd.f32 %v3727_v24, %v3726_v29  ;;  %v3662_v15 = vadd.f32 %v3661_v1, %v3660_v12  ;;  %v3733_v41 = vsel %vm3635_vm6, %v3703_v28, 0.0  ;;  %v3838_v29 = vpop.permute.xlu1 %3837 }
 0x361   :  { %v3729_v61 = vsel %vm3635_vm6, %v3701_v62, 0.0 }
 0x362   :  { %v3664_v53 = vadd.f32 %v3663_v50, %v3662_v15  ;;  %v3730_v37 = vadd.f32 %v3729_v61, %v3728_v20 }
 0x364   :  { %v3666_v57 = vadd.f32 %v3665_v27, %v3664_v53  ;;  %v3732_v63 = vadd.f32 %v3731_v49, %v3730_v37  ;;  %v3842_v24 = vpop.permute.xlu1 %3841  ;;  %v3840_v37 = vadd.f32 %v3838_v29, %v6492_v56  ;;  %v3765_v29 = vlaneseq }
 0x366   :  { %v3667_v44 = vrot.slane %v3666_v57, 4  ;;  %v3734_v31 = vadd.f32 %v3733_v41, %v3732_v63 }
 0x368   :  { %v3668_v58 = vadd.f32 %v3667_v44, %v3666_v57  ;;  %v3735_v0 = vrot.slane %v3734_v31, 4  ;;  %v3844_v57 = vadd.f32 %v3842_v24, %v3840_v37 }
 0x36a   :  { %v3669_v16 = vrot.slane %v3668_v58, 2  ;;  %v3736_v48 = vadd.f32 %v3735_v0, %v3734_v31  ;;  %v3907_v0 = vadd.f32 %v3905_v55, %v6498_v34 }
 0x36c   :  { %v3670_v40 = vadd.f32 %v3669_v16, %v3668_v58  ;;  %v3737_v51 = vrot.slane %v3736_v48, 2 }
 0x36e   :  { %v3671_v13 = vrot.slane %v3670_v40, 1  ;;  %v3738_v19 = vadd.f32 %v3737_v51, %v3736_v48 }
 0x370   :  { %v3672_v18 = vadd.f32 %v3671_v13, %v3670_v40  ;;  %v3739_v36 = vrot.slane %v3738_v19, 1 }
 0x372   :  { %3682 = vrot.lane.b32.xlu1 %v3672_v18, %s5209_s2  ;;  %3674 = vrot.lane.b32.xlu0 %v3672_v18, %s5207_s4  ;;  %v3740_v12 = vadd.f32 %v3739_v36, %v3738_v19 }
 0x376   :  { %3742 = vrot.lane.b32.xlu1 %v3740_v12, %s5207_s4  ;;  %3678 = vrot.lane.b32.xlu0 %v3672_v18, %s5208_s5 }
 0x37a   :  { %3845 = vrot.lane.b32.xlu1 %v6492_v56, %s5209_s2  ;;  %3746 = vrot.lane.b32.xlu0 %v3740_v12, %s5208_s5 }
 0x37e   :  { %3912 = vrot.lane.b32.xlu1 %v6498_v34, %s5209_s2  ;;  %3750 = vrot.lane.b32.xlu0 %v3740_v12, %s5209_s2 }
 0x382   :  { %3908 = vrot.lane.b32.xlu0 %v6498_v34, %s5208_s5  ;;  %v3759_v34 = vld [vmem:[%s6784_s6] sm:$0x1] }
 0x3e4   :  { %v3683_v1 = vpop.permute.xlu1 %3682  ;;  %v3675_v62 = vpop.permute.xlu0 %3674 }
 0x3e5   :  { %v3677_v20 = vadd.f32 %v3675_v62, %v3672_v18 }
 0x3e8   :  { %v3743_v15 = vpop.permute.xlu1 %3742  ;;  %v3679_v50 = vpop.permute.xlu0 %3678 }
 0x3e9   :  { %v3681_v28 = vadd.f32 %v3679_v50, %v3677_v20  ;;  %v3745_v49 = vadd.f32 %v3743_v15, %v3740_v12  ;;  %v3766_v20 = vshrl.u32 %v3765_v29, 7 }
 0x3eb   :  { %v3685_v61 = vadd.f32 %v3683_v1, %v3681_v28  ;;  %v6651_v55 = vsub.s32 0, %v3766_v20 }
 0x3ec   :  { %v3747_v53 = vpop.permute.xlu0 %3746  ;;  %v3846_v27 = vpop.permute.xlu1 %3845 }
 0x3ed   :  { %v3687_v63 = vmul.f32 0.001953125, %v3685_v61  ;;  %v3749_v41 = vadd.f32 %v3747_v53, %v3745_v49  ;;  %v3848_v31 = vadd.f32 %v3846_v27, %v3844_v57  ;;  %v3921_v61 = vld [vmem:[%s6786_s8] sm:$0x1]  ;;  %s5212_s8 = smov 48  }
 0x3ee   :  { %v3923_v49 = vld [vmem:[%s6787_s9] sm:$0x1] }
 0x3ef   :  { %v3755_v16 = vmul.f32 %v3687_v63, %v3687_v63  ;;  %v3849_v51 = vmul.f32 0.001953125, %v3848_v31 }
 0x3f0   :  { %v3751_v44 = vpop.permute.xlu0 %3750  ;;  %v3913_v18 = vpop.permute.xlu1 %3912 }
 0x3f1   :  { %v3753_v58 = vadd.f32 %v3751_v44, %v3749_v41  ;;  %v3917_v56 = vmul.f32 %v3849_v51, %v3849_v51  ;;  %v3761_v44 = vld [vmem:[%s6785_s7] sm:$0x1] }
 0x3f3   :  { %v3754_v48 = vmul.f32 0.001953125, %v3753_v58 }
 0x3f4   :  { %v3909_v40 = vpop.permute.xlu0 %3908 }
 0x3f5   :  { %v3756_v13 = vsub.f32 %v3754_v48, %v3755_v16  ;;  %v3911_v19 = vadd.f32 %v3909_v40, %v3907_v0 }
 0x3f7   :  { %v3757_v36 = vadd.f32 1e-05, %v3756_v13  ;;  %v3915_v1 = vadd.f32 %v3913_v18, %v3911_v19 }
 0x3f9   :  { %5125 = vrsqrt.f32 %v3757_v36  ;;  %v3916_v12 = vmul.f32 0.001953125, %v3915_v1 }
 0x3fb   :  { %v3918_v24 = vsub.f32 %v3916_v12, %v3917_v56 }
 0x3fd   :  { %v3919_v62 = vadd.f32 1e-05, %v3918_v24 }
 0x3ff   :  { %5127 = vrsqrt.f32 %v3919_v62 }
 0x403   :  { %v5126_v15 = vpop.eup %5125 }
 0x404   :  { %v3760_v50 = vmul.f32 %v5126_v15, %v3759_v34 }
 0x406   :  { %v3768_v28 = vrot.slane %v3760_v50, %v6651_v55  ;;  %v3762_v41 = vmul.f32 %v3760_v50, %v3687_v63 }
 0x408   :  { %3772 = vrot.lane.b32.xlu1 %v3768_v28, %s5210_s21  ;;  %v3763_v0 = vsub.f32 %v3761_v44, %v3762_v41 }
 0x409   :  { %v5128_v53 = vpop.eup %5127 }
 0x40a   :  { %v3922_v37 = vmul.f32 %v5128_v53, %v3921_v61  ;;  %v3786_v16 = vrot.slane %v3763_v0, %v6651_v55 }
 0x40c   :  { %v3930_v27 = vrot.slane %v3922_v37, %v6651_v55  ;;  %v3924_v57 = vmul.f32 %v3922_v37, %v3849_v51 }
 0x40e   :  { %3931 = vrot.lane.b32.xlu0 %v3930_v27, %s5211_s27  ;;  %v3925_v31 = vsub.f32 %v3923_v49, %v3924_v57 }
 0x410   :  { %v3947_v58 = vrot.slane %v3925_v31, %v6651_v55 }
 0x412   :  { %3934 = vrot.lane.b32.xlu0 %v3930_v27, %s5210_s21  ;;  %3948 = vrot.lane.b32.xlu1 %v3947_v58, %s5211_s27 }
 0x416   :  { %3769 = vrot.lane.b32.xlu0 %v3768_v28, %s5211_s27  ;;  %3787 = vrot.lane.b32.xlu1 %v3786_v16, %s5211_s27 }
 0x41a   :  { %3775 = vrot.lane.b32.xlu0 %v3768_v28, %s5212_s8  ;;  %3790 = vrot.lane.b32.xlu1 %v3786_v16, %s5210_s21 }
 0x41e   :  { %3937 = vrot.lane.b32.xlu0 %v3930_v27, %s5212_s8  ;;  %3793 = vrot.lane.b32.xlu1 %v3786_v16, %s5212_s8 }
 0x422   :  { %3951 = vrot.lane.b32.xlu0 %v3947_v58, %s5210_s21  ;;  %3954 = vrot.lane.b32.xlu1 %v3947_v58, %s5212_s8 }
 0x47a   :  { %v3773_v63 = vpop.permute.xlu1 %3772 }
 0x480   :  { %v3932_v48 = vpop.permute.xlu0 %3931 }
 0x481   :  { %v3940_v24 = vsel %vm239_vm3, %v3922_v37, %v3932_v48 }
 0x484   :  { %v3935_v40 = vpop.permute.xlu0 %3934  ;;  %v3949_v51 = vpop.permute.xlu1 %3948 }
 0x485   :  { %v3941_v62 = vsel %vm117_vm0, %v3940_v24, %v3935_v40  ;;  %v3957_v28 = vsel %vm239_vm3, %v3925_v31, %v3949_v51 }
 0x488   :  { %v3770_v13 = vpop.permute.xlu0 %3769  ;;  %v3788_v19 = vpop.permute.xlu1 %3787 }
 0x489   :  { %v3778_v18 = vsel %vm239_vm3, %v3760_v50, %v3770_v13  ;;  %v3796_v20 = vsel %vm239_vm3, %v3763_v0, %v3788_v19 }
 0x48a   :  { %v3779_v36 = vsel %vm117_vm0, %v3778_v18, %v3773_v63 }
 0x48c   :  { %v3776_v1 = vpop.permute.xlu0 %3775  ;;  %v3791_v56 = vpop.permute.xlu1 %3790 }
 0x48d   :  { %v3781_v12 = vsel %vm3780_vm7, %v3779_v36, %v3776_v1  ;;  %v3797_v53 = vsel %vm117_vm0, %v3796_v20, %v3791_v56 }
 0x48e   :  { %v3963_v29 = vrot.slane %v3781_v12, %v6651_v55 }
 0x490   :  { %v3938_v34 = vpop.permute.xlu0 %3937  ;;  %v3794_v15 = vpop.permute.xlu1 %3793  ;;  %v3964_v50 = vmul.f32 %v3963_v29, %v6528_v2  ;;  %v3965_v61 = vmul.f32 %v3963_v29, %v6534_v11  ;;  %v3966_v49 = vmul.f32 %v6526_v7, %v3963_v29  ;;  %v3967_v27 = vmul.f32 %v6532_v17, %v3963_v29 }
 0x491   :  { %v3968_v37 = vmul.f32 %v3963_v29, %v6555_v46  ;;  %v3969_v57 = vmul.f32 %v3963_v29, %v6564_v6  ;;  %v3970_v41 = vmul.f32 %v6553_v33, %v3963_v29  ;;  %v3971_v44 = vmul.f32 %v6562_v39, %v3963_v29 }
 0x492   :  { %v3972_v31 = vmul.f32 %v3963_v29, %v6583_v32  ;;  %v3973_v2 = vmul.f32 %v3963_v29, %v6592_v21  ;;  %v3974_v11 = vmul.f32 %v6581_v47, %v3963_v29  ;;  %v3975_v58 = vmul.f32 %v6590_v42, %v3963_v29 }
 0x493   :  { %v3942_v7 = vsel %vm3780_vm7, %v3941_v62, %v3938_v34  ;;  %v3798_v17 = vsel %vm3780_vm7, %v3797_v53, %v3794_v15  ;;  %v3976_v6 = vmul.f32 %v3963_v29, %v6611_v10  ;;  %v3977_v33 = vmul.f32 %v3963_v29, %v6620_v14 }
 0x494   :  { %v3952_v0 = vpop.permute.xlu0 %3951  ;;  %v3955_v46 = vpop.permute.xlu1 %3954  ;;  %v4003_v39 = vrot.slane %v3942_v7, %v6651_v55  ;;  %v3978_v21 = vmul.f32 %v6609_v22, %v3963_v29  ;;  %v3979_v47 = vmul.f32 %v6618_v52, %v3963_v29  ;;  %v3983_v42 = vrot.slane %v3798_v17, %v6651_v55 }
 0x495   :  { %v3958_v32 = vsel %vm117_vm0, %v3957_v28, %v3952_v0 }
 0x496   :  { %v3959_v16 = vsel %vm3780_vm7, %v3958_v32, %v3955_v46  ;;  %v4004_v63 = vmul.f32 %v4003_v39, %v6356_v25  ;;  %v4005_v48 = vmul.f32 %v4003_v39, %v6368_v9  ;;  %v4006_v10 = vmul.f32 %v6354_v3, %v4003_v39 }
 0x497   :  { %v4007_v14 = vmul.f32 %v6364_v43, %v4003_v39  ;;  %v4008_v40 = vmul.f32 %v4003_v39, %v6391_v30  ;;  %v4009_v51 = vmul.f32 %v4003_v39, %v6403_v35  ;;  %v4010_v22 = vmul.f32 %v6389_v45, %v4003_v39 }
 0x498   :  { %v4011_v52 = vmul.f32 %v6399_v4, %v4003_v39  ;;  %v4012_v13 = vmul.f32 %v4003_v39, %v6423_v26  ;;  %v4013_v19 = vmul.f32 %v4003_v39, %v6435_v54  ;;  %v4014_v25 = vmul.f32 %v6421_v8, %v4003_v39 }
 0x499   :  { %v4015_v9 = vmul.f32 %v6431_v60, %v4003_v39  ;;  %v4016_v3 = vmul.f32 %v4003_v39, %v6455_v59  ;;  %v4017_v43 = vmul.f32 %v4003_v39, %v6467_v5  ;;  %v4018_v30 = vmul.f32 %v6453_v23, %v4003_v39 }
 0x49a   :  { %v4019_v35 = vmul.f32 %v6463_v38, %v4003_v39  ;;  %v3984_v18 = vadd.f32 %v3983_v42, %v3964_v50  ;;  %v3985_v45 = vadd.f32 %v3983_v42, %v3965_v61  ;;  %v3986_v36 = vadd.f32 %v3983_v42, %v3966_v49 }
 0x49b   :  { %v3987_v4 = vadd.f32 %v3983_v42, %v3967_v27  ;;  %v3988_v1 = vadd.f32 %v3983_v42, %v3968_v37  ;;  %v3989_v26 = vadd.f32 %v3983_v42, %v3969_v57  ;;  %v3990_v56 = vadd.f32 %v3983_v42, %v3970_v41 }
 0x49c   :  { %v3991_v54 = vadd.f32 %v3983_v42, %v3971_v44  ;;  %v3992_v12 = vadd.f32 %v3983_v42, %v3972_v31  ;;  %v3993_v8 = vadd.f32 %v3983_v42, %v3973_v2  ;;  %v3994_v29 = vadd.f32 %v3983_v42, %v3974_v11 }
 0x49d   :  { %v3995_v60 = vadd.f32 %v3983_v42, %v3975_v58  ;;  %v3996_v24 = vadd.f32 %v3983_v42, %v3976_v6  ;;  %v3997_v59 = vadd.f32 %v3983_v42, %v3977_v33  ;;  %v3998_v62 = vadd.f32 %v3983_v42, %v3978_v21 }
 0x49e   :  { %v3999_v5 = vadd.f32 %v3983_v42, %v3979_v47  ;;  %v4020_v20 = vadd.f32 %v4004_v63, %v3984_v18  ;;  %v4021_v23 = vadd.f32 %v4005_v48, %v3985_v45  ;;  %v4022_v34 = vadd.f32 %v4006_v10, %v3986_v36 }
 0x49f   :  { %v4023_v38 = vadd.f32 %v4007_v14, %v3987_v4  ;;  %v4024_v15 = vadd.f32 %v4008_v40, %v3988_v1  ;;  %v4025_v28 = vadd.f32 %v4009_v51, %v3989_v26  ;;  %v4026_v50 = vadd.f32 %v4010_v22, %v3990_v56 }
 0x4a0   :  { %v4027_v61 = vadd.f32 %v4011_v52, %v3991_v54  ;;  %v4028_v53 = vadd.f32 %v4012_v13, %v3992_v12  ;;  %v4029_v49 = vadd.f32 %v4013_v19, %v3993_v8  ;;  %v4030_v27 = vadd.f32 %v4014_v25, %v3994_v29 }
 0x4a1   :  { %v4031_v37 = vadd.f32 %v4015_v9, %v3995_v60  ;;  %v4032_v57 = vadd.f32 %v4016_v3, %v3996_v24  ;;  %v4033_v41 = vadd.f32 %v4017_v43, %v3997_v59  ;;  %v4034_v44 = vadd.f32 %v4018_v30, %v3998_v62 }
 0x4a2   :  { %v4035_v31 = vadd.f32 %v4019_v35, %v3999_v5  ;;  %v4039_v2 = vrot.slane %v3959_v16, %v6651_v55 }
 0x4a4   :  { %v4040_v11 = vadd.f32 %v4039_v2, %v4020_v20  ;;  %v4041_v58 = vadd.f32 %v4039_v2, %v4021_v23  ;;  %v4042_v7 = vadd.f32 %v4039_v2, %v4022_v34  ;;  %v4043_v17 = vadd.f32 %v4039_v2, %v4023_v38 }
 0x4a5   :  { %v4044_v0 = vadd.f32 %v4039_v2, %v4024_v15  ;;  %v4045_v46 = vadd.f32 %v4039_v2, %v4025_v28  ;;  %v4046_v6 = vadd.f32 %v4039_v2, %v4026_v50  ;;  %v4047_v33 = vadd.f32 %v4039_v2, %v4027_v61 }
 0x4a6   :  { %v4048_v39 = vadd.f32 %v4039_v2, %v4028_v53  ;;  %v4049_v32 = vadd.f32 %v4039_v2, %v4029_v49  ;;  %v4050_v21 = vadd.f32 %v4039_v2, %v4030_v27  ;;  %v4051_v47 = vadd.f32 %v4039_v2, %v4031_v37 }
 0x4a7   :  { %v4052_v42 = vadd.f32 %v4039_v2, %v4032_v57  ;;  %v4053_v63 = vadd.f32 %v4039_v2, %v4033_v41  ;;  %v4054_v48 = vadd.f32 %v4039_v2, %v4034_v44  ;;  %v4055_v10 = vadd.f32 %v4039_v2, %v4035_v31 }
 0x4a8   :  { %v4056_v14 = vmax.f32 %v4040_v11, 0.0  ;;  %v4057_v40 = vmax.f32 %v4041_v58, 0.0  ;;  %v4058_v51 = vmax.f32 %v4042_v7, 0.0  ;;  %v4059_v55 = vmax.f32 %v4043_v17, 0.0 }
 0x4a9   :  { %v4060_v16 = vmax.f32 %v4044_v0, 0.0  ;;  %v4061_v22 = vmax.f32 %v4045_v46, 0.0  ;;  %v4062_v52 = vmax.f32 %v4046_v6, 0.0  ;;  %v4063_v13 = vmax.f32 %v4047_v33, 0.0 }
 0x4aa   :  { %v4064_v19 = vmax.f32 %v4048_v39, 0.0  ;;  %v4065_v25 = vmax.f32 %v4049_v32, 0.0  ;;  %v4066_v9 = vmax.f32 %v4050_v21, 0.0  ;;  %v4067_v3 = vmax.f32 %v4051_v47, 0.0  ;;  %4072 = vst.msk [vmem:[%s6788_s10] sm:$0xff] %vm3635_vm6, %v4056_v14  ;;  %4073 = vst.msk [vmem:[%s6788_s10 + $0x8] sm:$0xff] %vm3635_vm6, %v4057_v40 }
 0x4ab   :  { %4074 = vst.msk [vmem:[%s6788_s10 + $0x10] sm:$0xff] %vm3635_vm6, %v4058_v51  ;;  %4075 = vst.msk [vmem:[%s6788_s10 + $0x18] sm:$0xff] %vm3635_vm6, %v4059_v55  ;;  %v4068_v43 = vmax.f32 %v4052_v42, 0.0  ;;  %v4069_v30 = vmax.f32 %v4053_v63, 0.0  ;;  %v4070_v35 = vmax.f32 %v4054_v48, 0.0  ;;  %v4071_v18 = vmax.f32 %v4055_v10, 0.0 }
 0x4ac   :  { %4076 = vst.msk [vmem:[%s6788_s10 + $0x20] sm:$0xff] %vm3635_vm6, %v4060_v16  ;;  %4077 = vst.msk [vmem:[%s6788_s10 + $0x28] sm:$0xff] %vm3635_vm6, %v4061_v22 }
 0x4ad   :  { %4078 = vst.msk [vmem:[%s6788_s10 + $0x30] sm:$0xff] %vm3635_vm6, %v4062_v52  ;;  %4079 = vst.msk [vmem:[%s6788_s10 + $0x38] sm:$0xff] %vm3635_vm6, %v4063_v13 }
 0x4ae   :  { %4080 = vst.msk [vmem:[%s6788_s10 + $0x40] sm:$0xff] %vm3635_vm6, %v4064_v19  ;;  %4081 = vst.msk [vmem:[%s6788_s10 + $0x48] sm:$0xff] %vm3635_vm6, %v4065_v25 }
 0x4af   :  { %4082 = vst.msk [vmem:[%s6788_s10 + $0x50] sm:$0xff] %vm3635_vm6, %v4066_v9  ;;  %4083 = vst.msk [vmem:[%s6788_s10 + $0x58] sm:$0xff] %vm3635_vm6, %v4067_v3 }
 0x4b0   :  { %4084 = vst.msk [vmem:[%s6788_s10 + $0x60] sm:$0xff] %vm3635_vm6, %v4068_v43  ;;  %4085 = vst.msk [vmem:[%s6788_s10 + $0x68] sm:$0xff] %vm3635_vm6, %v4069_v30 }
 0x4b1   :  { %4086 = vst.msk [vmem:[%s6788_s10 + $0x70] sm:$0xff] %vm3635_vm6, %v4070_v35  ;;  %4087 = vst.msk [vmem:[%s6788_s10 + $0x78] sm:$0xff] %vm3635_vm6, %v4071_v18 }
 0x4b2   :  { %4092 = vsyncpa [#allocation5], 1 }
 0x4b3   :  { %4093 = vsyncpa [#allocation7], 1 }

</bundles_post_ra>
